<compile_context>
chip_gen: v5e
topology: v5e:2x2
jax: 0.10.0
libtpu: 0.0.40
codegen_flags: <defaults>
</compile_context>

<pallas_src>
import numpy as np

import jax
import jax.numpy as jnp
from jax import lax
from jax.experimental import pallas as pl
from jax.experimental.pallas import tpu as pltpu

BN_EPS = 1e-5
LANE = 128
VMEM_LIMIT = 32 * 1024 * 1024  # safe on v5e/v6e (128 MiB) and v7x (64 MiB) TensorCores


def _round_up(x, m):
    return (x + m - 1) // m * m


# ------------------------------ Pallas kernels ------------------------------

def conv3x3_stats_kernel(x_ref, w_ref, y_ref, stats_ref):
    """Fused-im2col 3x3 conv (9 accumulated MXU dots) + per-tile BN partial sums.

    x_ref:     (1, th+2, W+2, Cp)  bf16  haloed input band (spatially zero-padded)
    w_ref:     (9, Cp, Co)         bf16  weights, tap-major (kh*3 + kw)
    y_ref:     (1, th, W, Co)      f32   conv output (pre-BN)
    stats_ref: (1, 2, Co)          f32   row 0: sum over rows, row 1: sum of squares
    """
    _, th2, wd2, cp = x_ref.shape
    th, wd = th2 - 2, wd2 - 2
    co = y_ref.shape[-1]

    x = x_ref[0]                                     # (th+2, W+2, Cp) bf16
    acc = jnp.zeros((th * wd, co), jnp.float32)      # f32 accumulation
    for kh in range(3):                              # statically unrolled: 9 MXU dots
        for kw in range(3):
            patch = x[kh:kh + th, kw:kw + wd, :].reshape(th * wd, cp)
            acc = acc + jnp.dot(patch, w_ref[kh * 3 + kw],
                                preferred_element_type=jnp.float32)

    y_ref[0] = acc.reshape(th, wd, co)
    # Per-tile partial sums (small cross-sublane reductions, folded globally in wrapper).
    stats_ref[0, 0:1, :] = jnp.sum(acc, axis=0, keepdims=True)
    stats_ref[0, 1:2, :] = jnp.sum(acc * acc, axis=0, keepdims=True)


def bn_relu_kernel(y_ref, scale_ref, shift_ref, o_ref):
    """Fused BatchNorm affine + ReLU: o = max(y * scale + shift, 0)."""
    z = y_ref[...] * scale_ref[...] + shift_ref[...]
    o_ref[...] = jnp.maximum(z, 0.0).astype(o_ref.dtype)


# ------------------------------ wrapper glue ------------------------------

def _pick_tile_h(h):
    for th in (8, 16, 4, 32, 2, 1):
        if h % th == 0:
            return th
    return h


def _band_and_pad(x_nhwc, tile_h):
    """(N,H,W,Cp) -> (N*T, tile_h+2, W+2, Cp): zero-pad spatial, 2 halo rows per band.

    Halo duplication costs (tile_h+2)/tile_h (~1.25x) HBM traffic instead of the 9x of a
    materialized im2col, while keeping simple non-overlapping BlockSpec auto-pipelining.
    """
    n, h, w, cp = x_nhwc.shape
    t = h // tile_h
    xp = jnp.pad(x_nhwc, ((0, 0), (1, 1), (1, 1), (0, 0)))
    bands = [xp[:, i * tile_h: i * tile_h + tile_h + 2] for i in range(t)]
    xb = jnp.stack(bands, axis=1)                    # (N, T, th+2, W+2, Cp)
    return xb.reshape(n * t, tile_h + 2, w + 2, cp)


def _conv3x3_bn_relu(x_nhwc, w9, gamma, beta, out_dtype):
    """Conv3x3(pad=1, no bias) + BatchNorm2d(training batch stats) + ReLU.

    x_nhwc: (N, H, W, Cp) bf16 (channels zero-padded to multiple of 128)
    w9:     (9, Cp, Co)   bf16 (zero-padded)
    gamma, beta: (Co,)    f32  (zero-padded)
    returns (N, H, W, Co) out_dtype
    """
    n, h, wd, cp = x_nhwc.shape
    co = w9.shape[-1]
    th = _pick_tile_h(h)
    t = h // th
    g = n * t

    xb = _band_and_pad(x_nhwc, th)                   # (G, th+2, W+2, Cp)

    flops = 2 * g * th * wd * (9 * cp) * co
    bytes_accessed = (xb.size * xb.dtype.itemsize
                      + w9.size * w9.dtype.itemsize
                      + g * th * wd * co * 4
                      + g * 2 * co * 4)

    # Pass 1: conv + per-tile statistics (both outputs written per grid step -> fully
    # parallel grid; on v7x this shards across both TensorCores).
    y, stats = pl.pallas_call(
        conv3x3_stats_kernel,
        out_shape=(
            jax.ShapeDtypeStruct((g, th, wd, co), jnp.float32),
            jax.ShapeDtypeStruct((g, 2, co), jnp.float32),
        ),
        grid=(g,),
        in_specs=[
            pl.BlockSpec((1, th + 2, wd + 2, cp), lambda i: (i, 0, 0, 0)),
            pl.BlockSpec((9, cp, co), lambda i: (0, 0, 0)),   # weights stay resident
        ],
        out_specs=(
            pl.BlockSpec((1, th, wd, co), lambda i: (i, 0, 0, 0)),
            pl.BlockSpec((1, 2, co), lambda i: (i, 0, 0)),
        ),
        compiler_params=pltpu.CompilerParams(
            dimension_semantics=("parallel",),
            vmem_limit_bytes=VMEM_LIMIT,
        ),
        cost_estimate=pl.CostEstimate(flops=flops, transcendentals=0,
                                      bytes_accessed=bytes_accessed),
    )(xb, w9)

    # Global BatchNorm batch statistics (biased, training mode) from per-tile partials,
    # folded into a single per-channel scale/shift (all f32).
    cnt = jnp.float32(n * h * wd)
    mean = jnp.sum(stats[:, 0, :], axis=0) / cnt
    var = jnp.maximum(jnp.sum(stats[:, 1, :], axis=0) / cnt - mean * mean, 0.0)
    inv = lax.rsqrt(var + BN_EPS)
    scale = (gamma * inv).reshape(1, co)
    shift = (beta - mean * gamma * inv).reshape(1, co)

    # Pass 2: lane-dense fused scale/shift + ReLU over the same row-band tiling.
    out = pl.pallas_call(
        bn_relu_kernel,
        out_shape=jax.ShapeDtypeStruct((g, th, wd, co), out_dtype),
        grid=(g,),
        in_specs=[
            pl.BlockSpec((1, th, wd, co), lambda i: (i, 0, 0, 0)),
            pl.BlockSpec((1, co), lambda i: (0, 0)),
            pl.BlockSpec((1, co), lambda i: (0, 0)),
        ],
        out_specs=pl.BlockSpec((1, th, wd, co), lambda i: (i, 0, 0, 0)),
        compiler_params=pltpu.CompilerParams(
            dimension_semantics=("parallel",),
            vmem_limit_bytes=VMEM_LIMIT,
        ),
    )(y, scale, shift)

    return out.reshape(n, h, wd, co)


def double_conv(x_nchw, params, out_channels):
    """Forward pass of DoubleConv. Input/output follow PyTorch NCHW.

    BatchNorm running_mean/running_var buffers are not maintained; normalization uses
    batch statistics, matching nn.BatchNorm2d forward in training mode.
    """
    x = jnp.transpose(x_nchw, (0, 2, 3, 1))          # NCHW -> NHWC
    cin = x.shape[-1]
    cin_p = params["w1"].shape[1]
    x = jnp.pad(x, ((0, 0), (0, 0), (0, 0), (0, cin_p - cin))).astype(jnp.bfloat16)

    a1 = _conv3x3_bn_relu(x, params["w1"], params["gamma1"], params["beta1"],
                          out_dtype=jnp.bfloat16)    # bf16 feeds the next conv's MXU
    a2 = _conv3x3_bn_relu(a1, params["w2"], params["gamma2"], params["beta2"],
                          out_dtype=jnp.float32)
    a2 = a2[..., :out_channels]                      # drop lane padding
    return jnp.transpose(a2, (0, 3, 1, 2))           # NHWC -> NCHW


# ------------------------------ params ------------------------------

def _prep_conv_weight(w_ochw, cin_p, cout_p):
    """(Cout, Cin, 3, 3) -> (9, Cin_p, Cout_p) bf16, tap-major (kh, kw), zero-padded."""
    co, ci, _, _ = w_ochw.shape
    w9 = jnp.transpose(w_ochw, (2, 3, 1, 0)).reshape(9, ci, co)
    w9 = jnp.pad(w9, ((0, 0), (0, cin_p - ci), (0, cout_p - co)))
    return w9.astype(jnp.bfloat16)


def _prep_bn_param(p, cp):
    return jnp.pad(p.astype(jnp.float32), (0, cp - p.shape[0]))


def init_params(key, in_channels, out_channels, mid_channels=None):
    if not mid_channels:
        mid_channels = out_channels
    cin_p = _round_up(in_channels, LANE)
    cmid_p = _round_up(mid_channels, LANE)
    cout_p = _round_up(out_channels, LANE)
    k1, k2 = jax.random.split(key)
    # Deterministic synthetic weights (shapes match nn.Conv2d, bias=False).
    w1 = jax.random.normal(k1, (mid_channels, in_channels, 3, 3), jnp.float32) * 0.1
    w2 = jax.random.normal(k2, (out_channels, mid_channels, 3, 3), jnp.float32) * 0.1
    return {
        "w1": _prep_conv_weight(w1, cin_p, cmid_p),
        "gamma1": _prep_bn_param(jnp.ones((mid_channels,)), cmid_p),  # BN default init
        "beta1": _prep_bn_param(jnp.zeros((mid_channels,)), cmid_p),
        "w2": _prep_conv_weight(w2, cmid_p, cout_p),
        "gamma2": _prep_bn_param(jnp.ones((out_channels,)), cout_p),
        "beta2": _prep_bn_param(jnp.zeros((out_channels,)), cout_p),
        # raw f32 weights kept only for the pure-JAX reference check
        "w1_raw": w1,
        "w2_raw": w2,
    }


# ------------------------------ pure-JAX reference ------------------------------

def _reference(x_nchw, params):
    """Reference DoubleConv forward on the same bf16-rounded inputs/weights (f32 accum)."""
    def conv_bn_relu(a_nhwc, w_ochw):
        a = a_nhwc.astype(jnp.bfloat16).astype(jnp.float32)
        wt = jnp.transpose(w_ochw, (2, 3, 1, 0)).astype(jnp.bfloat16).astype(jnp.float32)
        y = lax.conv_general_dilated(a, wt, (1, 1), "SAME",
                                     dimension_numbers=("NHWC", "HWIO", "NHWC"))
        mean = jnp.mean(y, axis=(0, 1, 2))
        var = jnp.mean((y - mean) ** 2, axis=(0, 1, 2))
        z = (y - mean) * lax.rsqrt(var + BN_EPS)     # gamma=1, beta=0
        return jnp.maximum(z, 0.0)

    a = jnp.transpose(x_nchw, (0, 2, 3, 1))
    a = conv_bn_relu(a, params["w1_raw"])
    a = conv_bn_relu(a, params["w2_raw"])
    return jnp.transpose(a, (0, 3, 1, 2))


if __name__ == "__main__":
    key = jax.random.PRNGKey(0)
    kx, kp = jax.random.split(key)

    N, Cin, H, W = 2, 4, 16, 16
    Cout = 8

    x = jax.random.normal(kx, (N, Cin, H, W), jnp.float32)
    params = init_params(kp, Cin, Cout)

    fwd = jax.jit(lambda xx: double_conv(xx, params, Cout))
    y = fwd(x)
    jax.block_until_ready(y)
    assert y.shape == (N, Cout, H, W), y.shape

    ref = _reference(x, params)
    np.testing.assert_allclose(np.asarray(y), np.asarray(ref), atol=5e-2, rtol=5e-2)

    print("KERNEL_OK")
</pallas_src>

<mosaic_0001>
module attributes {stable_mosaic.version = 11 : i64} {
  func.func @conv3x3_stats_kernel(%arg0: i32, %arg1: memref<1x10x18x128xbf16, #tpu.memory_space<vmem>>, %arg2: memref<9x128x128xbf16, #tpu.memory_space<vmem>>, %arg3: memref<1x8x16x128xf32, #tpu.memory_space<vmem>>, %arg4: memref<1x2x128xf32, #tpu.memory_space<vmem>>) attributes {dimension_semantics = [#tpu.dimension_semantics<parallel>], iteration_bounds = array<i64: 4>, scalar_prefetch = 0 : i64, scratch_operands = 0 : i64, tpu.core_type = #tpu.core_type<tc>, window_params = [{transform_indices = @transform_0, window_bounds = array<i64: 1, 10, 18, 128>}, {pipeline_mode = #tpu.pipeline_mode<synchronous>, transform_indices = @transform_1, window_bounds = array<i64: 9, 128, 128>}, {transform_indices = @transform_2, window_bounds = array<i64: 1, 8, 16, 128>}, {transform_indices = @transform_3, window_bounds = array<i64: 1, 2, 128>}]} {
    %c0 = arith.constant 0 : index
    %c0_0 = arith.constant 0 : index
    %c0_1 = arith.constant 0 : index
    %c0_2 = arith.constant 0 : index
    %0 = vector.load %arg1[%c0, %c0_0, %c0_1, %c0_2] : memref<1x10x18x128xbf16, #tpu.memory_space<vmem>>, vector<1x10x18x128xbf16>
    %1 = vector.shape_cast %0 : vector<1x10x18x128xbf16> to vector<10x18x128xbf16>
    %cst = arith.constant 0.000000e+00 : f32
    %2 = vector.broadcast %cst : f32 to vector<128x128xf32>
    %3 = vector.extract_strided_slice %1 {offsets = [0, 0, 0], sizes = [8, 16, 128], strides = [1, 1, 1]} : vector<10x18x128xbf16> to vector<8x16x128xbf16>
    %4 = vector.shape_cast %3 : vector<8x16x128xbf16> to vector<128x128xbf16>
    %c0_3 = arith.constant 0 : index
    %c0_4 = arith.constant 0 : index
    %c0_5 = arith.constant 0 : index
    %5 = vector.load %arg2[%c0_3, %c0_4, %c0_5] : memref<9x128x128xbf16, #tpu.memory_space<vmem>>, vector<1x128x128xbf16>
    %6 = vector.shape_cast %5 : vector<1x128x128xbf16> to vector<128x128xbf16>
    %cst_6 = arith.constant dense<0.000000e+00> : vector<128x128xf32>
    %7 = tpu.matmul %4, %6, %cst_6 {dimension_numbers = #tpu.dot_dimension_numbers<[1], [0], [0], [1], [0, 0, 1, 1], [], []>} : vector<128x128xbf16>, vector<128x128xbf16>, vector<128x128xf32> -> vector<128x128xf32>
    %8 = arith.addf %2, %7 : vector<128x128xf32>
    %9 = vector.extract_strided_slice %1 {offsets = [0, 1, 0], sizes = [8, 16, 128], strides = [1, 1, 1]} : vector<10x18x128xbf16> to vector<8x16x128xbf16>
    %10 = vector.shape_cast %9 : vector<8x16x128xbf16> to vector<128x128xbf16>
    %c1 = arith.constant 1 : index
    %c0_7 = arith.constant 0 : index
    %c0_8 = arith.constant 0 : index
    %11 = vector.load %arg2[%c1, %c0_7, %c0_8] : memref<9x128x128xbf16, #tpu.memory_space<vmem>>, vector<1x128x128xbf16>
    %12 = vector.shape_cast %11 : vector<1x128x128xbf16> to vector<128x128xbf16>
    %cst_9 = arith.constant dense<0.000000e+00> : vector<128x128xf32>
    %13 = tpu.matmul %10, %12, %cst_9 {dimension_numbers = #tpu.dot_dimension_numbers<[1], [0], [0], [1], [0, 0, 1, 1], [], []>} : vector<128x128xbf16>, vector<128x128xbf16>, vector<128x128xf32> -> vector<128x128xf32>
    %14 = arith.addf %8, %13 : vector<128x128xf32>
    %15 = vector.extract_strided_slice %1 {offsets = [0, 2, 0], sizes = [8, 16, 128], strides = [1, 1, 1]} : vector<10x18x128xbf16> to vector<8x16x128xbf16>
    %16 = vector.shape_cast %15 : vector<8x16x128xbf16> to vector<128x128xbf16>
    %c2 = arith.constant 2 : index
    %c0_10 = arith.constant 0 : index
    %c0_11 = arith.constant 0 : index
    %17 = vector.load %arg2[%c2, %c0_10, %c0_11] : memref<9x128x128xbf16, #tpu.memory_space<vmem>>, vector<1x128x128xbf16>
    %18 = vector.shape_cast %17 : vector<1x128x128xbf16> to vector<128x128xbf16>
    %cst_12 = arith.constant dense<0.000000e+00> : vector<128x128xf32>
    %19 = tpu.matmul %16, %18, %cst_12 {dimension_numbers = #tpu.dot_dimension_numbers<[1], [0], [0], [1], [0, 0, 1, 1], [], []>} : vector<128x128xbf16>, vector<128x128xbf16>, vector<128x128xf32> -> vector<128x128xf32>
    %20 = arith.addf %14, %19 : vector<128x128xf32>
    %21 = vector.extract_strided_slice %1 {offsets = [1, 0, 0], sizes = [8, 16, 128], strides = [1, 1, 1]} : vector<10x18x128xbf16> to vector<8x16x128xbf16>
    %22 = vector.shape_cast %21 : vector<8x16x128xbf16> to vector<128x128xbf16>
    %c3 = arith.constant 3 : index
    %c0_13 = arith.constant 0 : index
    %c0_14 = arith.constant 0 : index
    %23 = vector.load %arg2[%c3, %c0_13, %c0_14] : memref<9x128x128xbf16, #tpu.memory_space<vmem>>, vector<1x128x128xbf16>
    %24 = vector.shape_cast %23 : vector<1x128x128xbf16> to vector<128x128xbf16>
    %cst_15 = arith.constant dense<0.000000e+00> : vector<128x128xf32>
    %25 = tpu.matmul %22, %24, %cst_15 {dimension_numbers = #tpu.dot_dimension_numbers<[1], [0], [0], [1], [0, 0, 1, 1], [], []>} : vector<128x128xbf16>, vector<128x128xbf16>, vector<128x128xf32> -> vector<128x128xf32>
    %26 = arith.addf %20, %25 : vector<128x128xf32>
    %27 = vector.extract_strided_slice %1 {offsets = [1, 1, 0], sizes = [8, 16, 128], strides = [1, 1, 1]} : vector<10x18x128xbf16> to vector<8x16x128xbf16>
    %28 = vector.shape_cast %27 : vector<8x16x128xbf16> to vector<128x128xbf16>
    %c4 = arith.constant 4 : index
    %c0_16 = arith.constant 0 : index
    %c0_17 = arith.constant 0 : index
    %29 = vector.load %arg2[%c4, %c0_16, %c0_17] : memref<9x128x128xbf16, #tpu.memory_space<vmem>>, vector<1x128x128xbf16>
    %30 = vector.shape_cast %29 : vector<1x128x128xbf16> to vector<128x128xbf16>
    %cst_18 = arith.constant dense<0.000000e+00> : vector<128x128xf32>
    %31 = tpu.matmul %28, %30, %cst_18 {dimension_numbers = #tpu.dot_dimension_numbers<[1], [0], [0], [1], [0, 0, 1, 1], [], []>} : vector<128x128xbf16>, vector<128x128xbf16>, vector<128x128xf32> -> vector<128x128xf32>
    %32 = arith.addf %26, %31 : vector<128x128xf32>
    %33 = vector.extract_strided_slice %1 {offsets = [1, 2, 0], sizes = [8, 16, 128], strides = [1, 1, 1]} : vector<10x18x128xbf16> to vector<8x16x128xbf16>
    %34 = vector.shape_cast %33 : vector<8x16x128xbf16> to vector<128x128xbf16>
    %c5 = arith.constant 5 : index
    %c0_19 = arith.constant 0 : index
    %c0_20 = arith.constant 0 : index
    %35 = vector.load %arg2[%c5, %c0_19, %c0_20] : memref<9x128x128xbf16, #tpu.memory_space<vmem>>, vector<1x128x128xbf16>
    %36 = vector.shape_cast %35 : vector<1x128x128xbf16> to vector<128x128xbf16>
    %cst_21 = arith.constant dense<0.000000e+00> : vector<128x128xf32>
    %37 = tpu.matmul %34, %36, %cst_21 {dimension_numbers = #tpu.dot_dimension_numbers<[1], [0], [0], [1], [0, 0, 1, 1], [], []>} : vector<128x128xbf16>, vector<128x128xbf16>, vector<128x128xf32> -> vector<128x128xf32>
    %38 = arith.addf %32, %37 : vector<128x128xf32>
    %39 = vector.extract_strided_slice %1 {offsets = [2, 0, 0], sizes = [8, 16, 128], strides = [1, 1, 1]} : vector<10x18x128xbf16> to vector<8x16x128xbf16>
    %40 = vector.shape_cast %39 : vector<8x16x128xbf16> to vector<128x128xbf16>
    %c6 = arith.constant 6 : index
    %c0_22 = arith.constant 0 : index
    %c0_23 = arith.constant 0 : index
    %41 = vector.load %arg2[%c6, %c0_22, %c0_23] : memref<9x128x128xbf16, #tpu.memory_space<vmem>>, vector<1x128x128xbf16>
    %42 = vector.shape_cast %41 : vector<1x128x128xbf16> to vector<128x128xbf16>
    %cst_24 = arith.constant dense<0.000000e+00> : vector<128x128xf32>
    %43 = tpu.matmul %40, %42, %cst_24 {dimension_numbers = #tpu.dot_dimension_numbers<[1], [0], [0], [1], [0, 0, 1, 1], [], []>} : vector<128x128xbf16>, vector<128x128xbf16>, vector<128x128xf32> -> vector<128x128xf32>
    %44 = arith.addf %38, %43 : vector<128x128xf32>
    %45 = vector.extract_strided_slice %1 {offsets = [2, 1, 0], sizes = [8, 16, 128], strides = [1, 1, 1]} : vector<10x18x128xbf16> to vector<8x16x128xbf16>
    %46 = vector.shape_cast %45 : vector<8x16x128xbf16> to vector<128x128xbf16>
    %c7 = arith.constant 7 : index
    %c0_25 = arith.constant 0 : index
    %c0_26 = arith.constant 0 : index
    %47 = vector.load %arg2[%c7, %c0_25, %c0_26] : memref<9x128x128xbf16, #tpu.memory_space<vmem>>, vector<1x128x128xbf16>
    %48 = vector.shape_cast %47 : vector<1x128x128xbf16> to vector<128x128xbf16>
    %cst_27 = arith.constant dense<0.000000e+00> : vector<128x128xf32>
    %49 = tpu.matmul %46, %48, %cst_27 {dimension_numbers = #tpu.dot_dimension_numbers<[1], [0], [0], [1], [0, 0, 1, 1], [], []>} : vector<128x128xbf16>, vector<128x128xbf16>, vector<128x128xf32> -> vector<128x128xf32>
    %50 = arith.addf %44, %49 : vector<128x128xf32>
    %51 = vector.extract_strided_slice %1 {offsets = [2, 2, 0], sizes = [8, 16, 128], strides = [1, 1, 1]} : vector<10x18x128xbf16> to vector<8x16x128xbf16>
    %52 = vector.shape_cast %51 : vector<8x16x128xbf16> to vector<128x128xbf16>
    %c8 = arith.constant 8 : index
    %c0_28 = arith.constant 0 : index
    %c0_29 = arith.constant 0 : index
    %53 = vector.load %arg2[%c8, %c0_28, %c0_29] : memref<9x128x128xbf16, #tpu.memory_space<vmem>>, vector<1x128x128xbf16>
    %54 = vector.shape_cast %53 : vector<1x128x128xbf16> to vector<128x128xbf16>
    %cst_30 = arith.constant dense<0.000000e+00> : vector<128x128xf32>
    %55 = tpu.matmul %52, %54, %cst_30 {dimension_numbers = #tpu.dot_dimension_numbers<[1], [0], [0], [1], [0, 0, 1, 1], [], []>} : vector<128x128xbf16>, vector<128x128xbf16>, vector<128x128xf32> -> vector<128x128xf32>
    %56 = arith.addf %50, %55 : vector<128x128xf32>
    %57 = vector.shape_cast %56 : vector<128x128xf32> to vector<8x16x128xf32>
    %c0_31 = arith.constant 0 : index
    %c0_32 = arith.constant 0 : index
    %c0_33 = arith.constant 0 : index
    %c0_34 = arith.constant 0 : index
    %58 = vector.load %arg3[%c0_31, %c0_32, %c0_33, %c0_34] : memref<1x8x16x128xf32, #tpu.memory_space<vmem>>, vector<1x8x16x128xf32>
    %59 = vector.shape_cast %58 : vector<1x8x16x128xf32> to vector<8x16x128xf32>
    %60 = vector.shape_cast %57 : vector<8x16x128xf32> to vector<1x8x16x128xf32>
    tpu.vector_store %arg3[%c0_31, %c0_32, %c0_33, %c0_34], %60 {strides = array<i32>} : memref<1x8x16x128xf32, #tpu.memory_space<vmem>>, vector<1x8x16x128xf32>,
    %cst_35 = arith.constant dense<0.000000e+00> : vector<128xf32>
    %61 = vector.multi_reduction <add>, %56, %cst_35 [0] : vector<128x128xf32> to vector<128xf32>
    %62 = vector.shape_cast %61 : vector<128xf32> to vector<1x128xf32>
    %c0_36 = arith.constant 0 : index
    %c0_37 = arith.constant 0 : index
    %c0_38 = arith.constant 0 : index
    %63 = vector.load %arg4[%c0_36, %c0_37, %c0_38] : memref<1x2x128xf32, #tpu.memory_space<vmem>>, vector<1x1x128xf32>
    %64 = vector.shape_cast %63 : vector<1x1x128xf32> to vector<1x128xf32>
    %65 = vector.shape_cast %62 : vector<1x128xf32> to vector<1x1x128xf32>
    tpu.vector_store %arg4[%c0_36, %c0_37, %c0_38], %65 {strides = array<i32>} : memref<1x2x128xf32, #tpu.memory_space<vmem>>, vector<1x1x128xf32>,
    %66 = arith.mulf %56, %56 : vector<128x128xf32>
    %cst_39 = arith.constant dense<0.000000e+00> : vector<128xf32>
    %67 = vector.multi_reduction <add>, %66, %cst_39 [0] : vector<128x128xf32> to vector<128xf32>
    %68 = vector.shape_cast %67 : vector<128xf32> to vector<1x128xf32>
    %c0_40 = arith.constant 0 : index
    %c1_41 = arith.constant 1 : index
    %c0_42 = arith.constant 0 : index
    %69 = vector.load %arg4[%c0_40, %c1_41, %c0_42] : memref<1x2x128xf32, #tpu.memory_space<vmem>>, vector<1x1x128xf32>
    %70 = vector.shape_cast %69 : vector<1x1x128xf32> to vector<1x128xf32>
    %71 = vector.shape_cast %68 : vector<1x128xf32> to vector<1x1x128xf32>
    tpu.vector_store %arg4[%c0_40, %c1_41, %c0_42], %71 {strides = array<i32>} : memref<1x2x128xf32, #tpu.memory_space<vmem>>, vector<1x1x128xf32>,
    return
  }
  func.func @transform_0(%arg0: i32) -> (i32, i32, i32, i32) {
    %c0_i32 = arith.constant 0 : i32
    %c0_i32_0 = arith.constant 0 : i32
    %c0_i32_1 = arith.constant 0 : i32
    %c0_i32_2 = arith.constant 0 : i32
    return %arg0, %c0_i32, %c0_i32_0, %c0_i32_1 : i32, i32, i32, i32
  }
  func.func @transform_1(%arg0: i32) -> (i32, i32, i32) {
    %c0_i32 = arith.constant 0 : i32
    %c0_i32_0 = arith.constant 0 : i32
    %c0_i32_1 = arith.constant 0 : i32
    %c0_i32_2 = arith.constant 0 : i32
    return %c0_i32, %c0_i32_0, %c0_i32_1 : i32, i32, i32
  }
  func.func @transform_2(%arg0: i32) -> (i32, i32, i32, i32) {
    %c0_i32 = arith.constant 0 : i32
    %c0_i32_0 = arith.constant 0 : i32
    %c0_i32_1 = arith.constant 0 : i32
    %c0_i32_2 = arith.constant 0 : i32
    return %arg0, %c0_i32, %c0_i32_0, %c0_i32_1 : i32, i32, i32, i32
  }
  func.func @transform_3(%arg0: i32) -> (i32, i32, i32) {
    %c0_i32 = arith.constant 0 : i32
    %c0_i32_0 = arith.constant 0 : i32
    %c0_i32_1 = arith.constant 0 : i32
    return %arg0, %c0_i32, %c0_i32_0 : i32, i32, i32
  }
}

module attributes {stable_mosaic.version = 11 : i64} {
  func.func @bn_relu_kernel(%arg0: i32, %arg1: memref<1x8x16x128xf32, #tpu.memory_space<vmem>>, %arg2: memref<1x128xf32, #tpu.memory_space<vmem>>, %arg3: memref<1x128xf32, #tpu.memory_space<vmem>>, %arg4: memref<1x8x16x128xbf16, #tpu.memory_space<vmem>>) attributes {dimension_semantics = [#tpu.dimension_semantics<parallel>], iteration_bounds = array<i64: 4>, scalar_prefetch = 0 : i64, scratch_operands = 0 : i64, tpu.core_type = #tpu.core_type<tc>, window_params = [{transform_indices = @transform_0, window_bounds = array<i64: 1, 8, 16, 128>}, {pipeline_mode = #tpu.pipeline_mode<synchronous>, transform_indices = @transform_1, window_bounds = array<i64: 1, 128>}, {pipeline_mode = #tpu.pipeline_mode<synchronous>, transform_indices = @transform_2, window_bounds = array<i64: 1, 128>}, {transform_indices = @transform_3, window_bounds = array<i64: 1, 8, 16, 128>}]} {
    %c0 = arith.constant 0 : index
    %c0_0 = arith.constant 0 : index
    %c0_1 = arith.constant 0 : index
    %c0_2 = arith.constant 0 : index
    %0 = vector.load %arg1[%c0, %c0_0, %c0_1, %c0_2] : memref<1x8x16x128xf32, #tpu.memory_space<vmem>>, vector<1x8x16x128xf32>
    %c0_3 = arith.constant 0 : index
    %c0_4 = arith.constant 0 : index
    %1 = vector.load %arg2[%c0_3, %c0_4] : memref<1x128xf32, #tpu.memory_space<vmem>>, vector<1x128xf32>
    %2 = vector.shape_cast %1 : vector<1x128xf32> to vector<1x1x1x128xf32>
    %3 = vector.broadcast %2 : vector<1x1x1x128xf32> to vector<1x8x16x128xf32>
    %4 = arith.mulf %0, %3 : vector<1x8x16x128xf32>
    %c0_5 = arith.constant 0 : index
    %c0_6 = arith.constant 0 : index
    %5 = vector.load %arg3[%c0_5, %c0_6] : memref<1x128xf32, #tpu.memory_space<vmem>>, vector<1x128xf32>
    %6 = vector.shape_cast %5 : vector<1x128xf32> to vector<1x1x1x128xf32>
    %7 = vector.broadcast %6 : vector<1x1x1x128xf32> to vector<1x8x16x128xf32>
    %8 = arith.addf %4, %7 : vector<1x8x16x128xf32>
    %cst = arith.constant 0.000000e+00 : f32
    %9 = vector.broadcast %cst : f32 to vector<1x8x16x128xf32>
    %10 = arith.maximumf %8, %9 : vector<1x8x16x128xf32>
    %11 = arith.truncf %10 : vector<1x8x16x128xf32> to vector<1x8x16x128xbf16>
    %c0_7 = arith.constant 0 : index
    %c0_8 = arith.constant 0 : index
    %c0_9 = arith.constant 0 : index
    %c0_10 = arith.constant 0 : index
    %12 = vector.load %arg4[%c0_7, %c0_8, %c0_9, %c0_10] : memref<1x8x16x128xbf16, #tpu.memory_space<vmem>>, vector<1x8x16x128xbf16>
    tpu.vector_store %arg4[%c0_7, %c0_8, %c0_9, %c0_10], %11 {strides = array<i32>} : memref<1x8x16x128xbf16, #tpu.memory_space<vmem>>, vector<1x8x16x128xbf16>,
    return
  }
  func.func @transform_0(%arg0: i32) -> (i32, i32, i32, i32) {
    %c0_i32 = arith.constant 0 : i32
    %c0_i32_0 = arith.constant 0 : i32
    %c0_i32_1 = arith.constant 0 : i32
    %c0_i32_2 = arith.constant 0 : i32
    return %arg0, %c0_i32, %c0_i32_0, %c0_i32_1 : i32, i32, i32, i32
  }
  func.func @transform_1(%arg0: i32) -> (i32, i32) {
    %c0_i32 = arith.constant 0 : i32
    %c0_i32_0 = arith.constant 0 : i32
    %c0_i32_1 = arith.constant 0 : i32
    return %c0_i32, %c0_i32_0 : i32, i32
  }
  func.func @transform_2(%arg0: i32) -> (i32, i32) {
    %c0_i32 = arith.constant 0 : i32
    %c0_i32_0 = arith.constant 0 : i32
    %c0_i32_1 = arith.constant 0 : i32
    return %c0_i32, %c0_i32_0 : i32, i32
  }
  func.func @transform_3(%arg0: i32) -> (i32, i32, i32, i32) {
    %c0_i32 = arith.constant 0 : i32
    %c0_i32_0 = arith.constant 0 : i32
    %c0_i32_1 = arith.constant 0 : i32
    %c0_i32_2 = arith.constant 0 : i32
    return %arg0, %c0_i32, %c0_i32_0, %c0_i32_1 : i32, i32, i32, i32
  }
}

module attributes {stable_mosaic.version = 11 : i64} {
  func.func @bn_relu_kernel(%arg0: i32, %arg1: memref<1x8x16x128xf32, #tpu.memory_space<vmem>>, %arg2: memref<1x128xf32, #tpu.memory_space<vmem>>, %arg3: memref<1x128xf32, #tpu.memory_space<vmem>>, %arg4: memref<1x8x16x128xf32, #tpu.memory_space<vmem>>) attributes {dimension_semantics = [#tpu.dimension_semantics<parallel>], iteration_bounds = array<i64: 4>, scalar_prefetch = 0 : i64, scratch_operands = 0 : i64, tpu.core_type = #tpu.core_type<tc>, window_params = [{transform_indices = @transform_0, window_bounds = array<i64: 1, 8, 16, 128>}, {pipeline_mode = #tpu.pipeline_mode<synchronous>, transform_indices = @transform_1, window_bounds = array<i64: 1, 128>}, {pipeline_mode = #tpu.pipeline_mode<synchronous>, transform_indices = @transform_2, window_bounds = array<i64: 1, 128>}, {transform_indices = @transform_3, window_bounds = array<i64: 1, 8, 16, 128>}]} {
    %c0 = arith.constant 0 : index
    %c0_0 = arith.constant 0 : index
    %c0_1 = arith.constant 0 : index
    %c0_2 = arith.constant 0 : index
    %0 = vector.load %arg1[%c0, %c0_0, %c0_1, %c0_2] : memref<1x8x16x128xf32, #tpu.memory_space<vmem>>, vector<1x8x16x128xf32>
    %c0_3 = arith.constant 0 : index
    %c0_4 = arith.constant 0 : index
    %1 = vector.load %arg2[%c0_3, %c0_4] : memref<1x128xf32, #tpu.memory_space<vmem>>, vector<1x128xf32>
    %2 = vector.shape_cast %1 : vector<1x128xf32> to vector<1x1x1x128xf32>
    %3 = vector.broadcast %2 : vector<1x1x1x128xf32> to vector<1x8x16x128xf32>
    %4 = arith.mulf %0, %3 : vector<1x8x16x128xf32>
    %c0_5 = arith.constant 0 : index
    %c0_6 = arith.constant 0 : index
    %5 = vector.load %arg3[%c0_5, %c0_6] : memref<1x128xf32, #tpu.memory_space<vmem>>, vector<1x128xf32>
    %6 = vector.shape_cast %5 : vector<1x128xf32> to vector<1x1x1x128xf32>
    %7 = vector.broadcast %6 : vector<1x1x1x128xf32> to vector<1x8x16x128xf32>
    %8 = arith.addf %4, %7 : vector<1x8x16x128xf32>
    %cst = arith.constant 0.000000e+00 : f32
    %9 = vector.broadcast %cst : f32 to vector<1x8x16x128xf32>
    %10 = arith.maximumf %8, %9 : vector<1x8x16x128xf32>
    %c0_7 = arith.constant 0 : index
    %c0_8 = arith.constant 0 : index
    %c0_9 = arith.constant 0 : index
    %c0_10 = arith.constant 0 : index
    %11 = vector.load %arg4[%c0_7, %c0_8, %c0_9, %c0_10] : memref<1x8x16x128xf32, #tpu.memory_space<vmem>>, vector<1x8x16x128xf32>
    tpu.vector_store %arg4[%c0_7, %c0_8, %c0_9, %c0_10], %10 {strides = array<i32>} : memref<1x8x16x128xf32, #tpu.memory_space<vmem>>, vector<1x8x16x128xf32>,
    return
  }
  func.func @transform_0(%arg0: i32) -> (i32, i32, i32, i32) {
    %c0_i32 = arith.constant 0 : i32
    %c0_i32_0 = arith.constant 0 : i32
    %c0_i32_1 = arith.constant 0 : i32
    %c0_i32_2 = arith.constant 0 : i32
    return %arg0, %c0_i32, %c0_i32_0, %c0_i32_1 : i32, i32, i32, i32
  }
  func.func @transform_1(%arg0: i32) -> (i32, i32) {
    %c0_i32 = arith.constant 0 : i32
    %c0_i32_0 = arith.constant 0 : i32
    %c0_i32_1 = arith.constant 0 : i32
    return %c0_i32, %c0_i32_0 : i32, i32
  }
  func.func @transform_2(%arg0: i32) -> (i32, i32) {
    %c0_i32 = arith.constant 0 : i32
    %c0_i32_0 = arith.constant 0 : i32
    %c0_i32_1 = arith.constant 0 : i32
    return %c0_i32, %c0_i32_0 : i32, i32
  }
  func.func @transform_3(%arg0: i32) -> (i32, i32, i32, i32) {
    %c0_i32 = arith.constant 0 : i32
    %c0_i32_0 = arith.constant 0 : i32
    %c0_i32_1 = arith.constant 0 : i32
    %c0_i32_2 = arith.constant 0 : i32
    return %arg0, %c0_i32, %c0_i32_0, %c0_i32_1 : i32, i32, i32, i32
  }
}

</mosaic_0001>

<bundles_post_ra>
// kernel: _lambda_.5
= control target key start
LH: loop header
LB: loop body
LE: loop exit
PB: predicated region body
PF: predicated region fallthrough
CT: control target
= control target key end

     0   :  { %s428_s12 = smov 0   ;;  %s519_s0 = inlined_call_operand.vmem [shape: f32[4,8,16,128], index: 0, kind: input, shape index: {}]   ;;  %s520_s1 = inlined_call_operand.vmem [shape: f32[1,128], index: 1, kind: input, shape index: {}]   ;;  %s521_s2 = inlined_call_operand.vmem [shape: f32[1,128], index: 2, kind: input, shape index: {}]   ;;  %s522_s3 = inlined_call_operand.vmem [shape: bf16[4,8,16,128], index: 3, kind: output, shape index: {}]  }
   0x1 LB: > { %s330_s13 = sadd.s32 4294967295, %s406_s12   ;;  %p334_p0 = scmp.ge.s32.totalorder %s406_s12, 1  ;;  %s406_s12 = sphi %s428_s12, %s13_s12  }
   0x2   : > { %p137_p1 = scmp.lt.s32.totalorder %s406_s12, 5 }
   0x4   : > { %p138_p2 = pnand %p334_p0, %p137_p1 }
   0x5   : > { %p161_p3 = scmp.lt.s32.totalorder (!%p138_p2), %s330_s13, 3 }
   0x6   : > { %141 = sbr.rel (%p138_p2) target bundleno = 35 (0x23), region = 32 }
   0xb   : > { %s524_s13 = smov (!%p161_p3, %s330_s13), 3  ;;  %v441_v0 = vld [vmem:[%s520_s1] ss:$0 sm:$0xff] }
   0xc   : > { %s341_s16 = sshll.u32 %s524_s13, 7  ;;  %v452_v1 = vld [vmem:[%s521_s2] ss:$0 sm:$0xff]  ;;  %s342_s22 = sshll.u32 %s524_s13, 6 }
   0xd   : > { %s447_s19 = scalar_lea.vmem %s519_s0, %s341_s16  ;;  %s484_s25 = scalar_lea.vmem %s522_s3, %s342_s22 }
   0xe   : > { %v171_v2 = vld [vmem:[%s447_s19] sm:$0xff]  ;;  %v172_v3 = vld [vmem:[%s447_s19 + $0x8] sm:$0xff]  ;;  %v173_v4 = vld [vmem:[%s447_s19 + $0x10] sm:$0xff] }
   0xf   : > { %v191_v5 = vmul.f32 %v441_v0, %v171_v2  ;;  %v192_v6 = vmul.f32 %v441_v0, %v172_v3  ;;  %v174_v7 = vld [vmem:[%s447_s19 + $0x18] sm:$0xff]  ;;  %v193_v8 = vmul.f32 %v441_v0, %v173_v4  ;;  %v175_v9 = vld [vmem:[%s447_s19 + $0x20] sm:$0xff]  ;;  %v176_v10 = vld [vmem:[%s447_s19 + $0x28] sm:$0xff] }
  0x10   : > { %v194_v11 = vmul.f32 %v441_v0, %v174_v7  ;;  %v195_v12 = vmul.f32 %v441_v0, %v175_v9  ;;  %v196_v13 = vmul.f32 %v441_v0, %v176_v10  ;;  %v177_v14 = vld [vmem:[%s447_s19 + $0x30] sm:$0xff]  ;;  %v178_v15 = vld [vmem:[%s447_s19 + $0x38] sm:$0xff]  ;;  %v179_v24 = vld [vmem:[%s447_s19 + $0x40] sm:$0xff] }
  0x11   : > { %v211_v16 = vadd.f32 %v452_v1, %v191_v5  ;;  %v212_v17 = vadd.f32 %v452_v1, %v192_v6  ;;  %v213_v18 = vadd.f32 %v452_v1, %v193_v8  ;;  %v197_v19 = vmul.f32 %v441_v0, %v177_v14  ;;  %v180_v25 = vld [vmem:[%s447_s19 + $0x48] sm:$0xff]  ;;  %v181_v30 = vld [vmem:[%s447_s19 + $0x50] sm:$0xff]  ;;  %v182_v35 = vld [vmem:[%s447_s19 + $0x58] sm:$0xff] }
  0x12   : > { %v214_v20 = vadd.f32 %v452_v1, %v194_v11  ;;  %v215_v21 = vadd.f32 %v452_v1, %v195_v12  ;;  %v216_v22 = vadd.f32 %v452_v1, %v196_v13  ;;  %v198_v23 = vmul.f32 %v441_v0, %v178_v15  ;;  %v183_v36 = vld [vmem:[%s447_s19 + $0x60] sm:$0xff]  ;;  %v184_v41 = vld [vmem:[%s447_s19 + $0x68] sm:$0xff]  ;;  %v185_v42 = vld [vmem:[%s447_s19 + $0x70] sm:$0xff] }
  0x13   : > { %v227_v26 = vmax.f32 %v211_v16, 0.0  ;;  %v228_v27 = vmax.f32 %v212_v17, 0.0  ;;  %v229_v28 = vmax.f32 %v213_v18, 0.0  ;;  %v217_v29 = vadd.f32 %v452_v1, %v197_v19  ;;  %v186_v51 = vld [vmem:[%s447_s19 + $0x78] sm:$0xff] }
  0x14   : > { %v230_v31 = vmax.f32 %v214_v20, 0.0  ;;  %v231_v32 = vmax.f32 %v215_v21, 0.0  ;;  %v232_v33 = vmax.f32 %v216_v22, 0.0  ;;  %v218_v34 = vadd.f32 %v452_v1, %v198_v23 }
  0x15   : > { %v346_v37 = vpack.c.bf16 %v228_v27, %v227_v26  ;;  %v233_v38 = vmax.f32 %v217_v29, 0.0  ;;  %v199_v39 = vmul.f32 %v441_v0, %v179_v24  ;;  %v200_v40 = vmul.f32 %v441_v0, %v180_v25 }
  0x16   : > { %v351_v43 = vpack.c.bf16 %v230_v31, %v229_v28  ;;  %v356_v44 = vpack.c.bf16 %v232_v33, %v231_v32  ;;  %v234_v45 = vmax.f32 %v218_v34, 0.0  ;;  %v201_v46 = vmul.f32 %v441_v0, %v181_v30 }
  0x17   : > { %347 = vst [vmem:[%s484_s25] sm:$0xff] %v346_v37   ;;  %v219_v47 = vadd.f32 %v452_v1, %v199_v39  ;;  %v220_v48 = vadd.f32 %v452_v1, %v200_v40  ;;  %v202_v49 = vmul.f32 %v441_v0, %v182_v35  ;;  %v203_v50 = vmul.f32 %v441_v0, %v183_v36 }
  0x18   : > { %383 = vst [vmem:[%s484_s25 + $0x8] sm:$0xff] %v351_v43   ;;  %v361_v52 = vpack.c.bf16 %v234_v45, %v233_v38  ;;  %v221_v53 = vadd.f32 %v452_v1, %v201_v46  ;;  %v204_v54 = vmul.f32 %v441_v0, %v184_v41  ;;  %v205_v55 = vmul.f32 %v441_v0, %v185_v42 }
  0x19   : > { %384 = vst [vmem:[%s484_s25 + $0x10] sm:$0xff] %v356_v44   ;;  %v235_v56 = vmax.f32 %v219_v47, 0.0  ;;  %v236_v57 = vmax.f32 %v220_v48, 0.0  ;;  %v222_v58 = vadd.f32 %v452_v1, %v202_v49  ;;  %v223_v59 = vadd.f32 %v452_v1, %v203_v50 }
  0x1a   : > { %385 = vst [vmem:[%s484_s25 + $0x18] sm:$0xff] %v361_v52   ;;  %v237_v60 = vmax.f32 %v221_v53, 0.0  ;;  %v224_v61 = vadd.f32 %v452_v1, %v204_v54  ;;  %v206_v62 = vmul.f32 %v441_v0, %v186_v51  ;;  %v225_v63 = vadd.f32 %v452_v1, %v205_v55 }
  0x1b   : > { %v366_v2 = vpack.c.bf16 %v236_v57, %v235_v56  ;;  %v238_v3 = vmax.f32 %v222_v58, 0.0  ;;  %v239_v4 = vmax.f32 %v223_v59, 0.0 }
  0x1c   : > { %v240_v5 = vmax.f32 %v224_v61, 0.0  ;;  %v226_v6 = vadd.f32 %v452_v1, %v206_v62  ;;  %v241_v7 = vmax.f32 %v225_v63, 0.0 }
  0x1d   : > { %386 = vst [vmem:[%s484_s25 + $0x20] sm:$0xff] %v366_v2   ;;  %v371_v8 = vpack.c.bf16 %v238_v3, %v237_v60 }
  0x1e   : > { %v376_v9 = vpack.c.bf16 %v240_v5, %v239_v4  ;;  %v242_v10 = vmax.f32 %v226_v6, 0.0 }
  0x1f   : > { %387 = vst [vmem:[%s484_s25 + $0x28] sm:$0xff] %v371_v8  }
  0x20   : > { %388 = vst [vmem:[%s484_s25 + $0x30] sm:$0xff] %v376_v9   ;;  %v381_v11 = vpack.c.bf16 %v242_v10, %v241_v7 }
  0x22   : > { %389 = vst [vmem:[%s484_s25 + $0x38] sm:$0xff] %v381_v11  }
  0x23 PF: > { %s13_s12 = sadd.s32 1, %s406_s12  }
  0x24   : > { %p10_p4 = scmp.ge.s32.totalorder %s13_s12, 6  }
  0x26   :  { %12 = sbr.rel (!%p10_p4) target bundleno = 1 (0x1), region = 62 }

// kernel: _lambda_.7
= control target key start
LH: loop header
LB: loop body
LE: loop exit
PB: predicated region body
PF: predicated region fallthrough
CT: control target
= control target key end

     0   :  { %s365_s12 = smov 0   ;;  %s442_s0 = inlined_call_operand.vmem [shape: f32[4,8,16,128], index: 0, kind: input, shape index: {}]   ;;  %s443_s1 = inlined_call_operand.vmem [shape: f32[1,128], index: 1, kind: input, shape index: {}]   ;;  %s444_s2 = inlined_call_operand.vmem [shape: f32[1,128], index: 2, kind: input, shape index: {}]   ;;  %s445_s3 = inlined_call_operand.vmem [shape: f32[4,8,16,128], index: 3, kind: output, shape index: {}]  }
   0x1 LB: > { %s314_s13 = sadd.s32 4294967295, %s343_s12   ;;  %p318_p0 = scmp.ge.s32.totalorder %s343_s12, 1  ;;  %s343_s12 = sphi %s365_s12, %s13_s12  }
   0x2   : > { %p137_p1 = scmp.lt.s32.totalorder %s343_s12, 5 }
   0x4   : > { %p138_p2 = pnand %p318_p0, %p137_p1 }
   0x5   : > { %p161_p3 = scmp.lt.s32.totalorder (!%p138_p2), %s314_s13, 3 }
   0x6   : > { %141 = sbr.rel (%p138_p2) target bundleno = 37 (0x25), region = 32 }
   0xb   : > { %s447_s13 = smov (!%p161_p3, %s314_s13), 3  ;;  %v335_v0 = vld [vmem:[%s443_s1] ss:$0 sm:$0xff] }
   0xc   : > { %s325_s16 = sshll.u32 %s447_s13, 7  ;;  %v384_v1 = vld [vmem:[%s444_s2] ss:$0 sm:$0xff] }
   0xd   : > { %s379_s19 = scalar_lea.vmem %s442_s0, %s325_s16  ;;  %s400_s24 = scalar_lea.vmem %s445_s3, %s325_s16 }
   0xe   : > { %v171_v2 = vld [vmem:[%s379_s19] sm:$0xff]  ;;  %v172_v3 = vld [vmem:[%s379_s19 + $0x8] sm:$0xff]  ;;  %v173_v4 = vld [vmem:[%s379_s19 + $0x10] sm:$0xff] }
   0xf   : > { %v191_v5 = vmul.f32 %v335_v0, %v171_v2  ;;  %v192_v6 = vmul.f32 %v335_v0, %v172_v3  ;;  %v193_v7 = vmul.f32 %v335_v0, %v173_v4  ;;  %v174_v8 = vld [vmem:[%s379_s19 + $0x18] sm:$0xff]  ;;  %v175_v9 = vld [vmem:[%s379_s19 + $0x20] sm:$0xff]  ;;  %v176_v10 = vld [vmem:[%s379_s19 + $0x28] sm:$0xff] }
  0x10   : > { %v194_v11 = vmul.f32 %v335_v0, %v174_v8  ;;  %v195_v12 = vmul.f32 %v335_v0, %v175_v9  ;;  %v196_v13 = vmul.f32 %v335_v0, %v176_v10  ;;  %v177_v14 = vld [vmem:[%s379_s19 + $0x30] sm:$0xff]  ;;  %v178_v15 = vld [vmem:[%s379_s19 + $0x38] sm:$0xff]  ;;  %v179_v24 = vld [vmem:[%s379_s19 + $0x40] sm:$0xff] }
  0x11   : > { %v211_v16 = vadd.f32 %v384_v1, %v191_v5  ;;  %v212_v17 = vadd.f32 %v384_v1, %v192_v6  ;;  %v213_v18 = vadd.f32 %v384_v1, %v193_v7  ;;  %v197_v19 = vmul.f32 %v335_v0, %v177_v14  ;;  %v180_v25 = vld [vmem:[%s379_s19 + $0x48] sm:$0xff]  ;;  %v181_v26 = vld [vmem:[%s379_s19 + $0x50] sm:$0xff]  ;;  %v182_v31 = vld [vmem:[%s379_s19 + $0x58] sm:$0xff] }
  0x12   : > { %v214_v20 = vadd.f32 %v384_v1, %v194_v11  ;;  %v215_v21 = vadd.f32 %v384_v1, %v195_v12  ;;  %v216_v22 = vadd.f32 %v384_v1, %v196_v13  ;;  %v198_v23 = vmul.f32 %v335_v0, %v178_v15  ;;  %v183_v32 = vld [vmem:[%s379_s19 + $0x60] sm:$0xff]  ;;  %v184_v33 = vld [vmem:[%s379_s19 + $0x68] sm:$0xff]  ;;  %v185_v37 = vld [vmem:[%s379_s19 + $0x70] sm:$0xff] }
  0x13   : > { %v227_v27 = vmax.f32 %v211_v16, 0.0  ;;  %v228_v28 = vmax.f32 %v212_v17, 0.0  ;;  %v229_v29 = vmax.f32 %v213_v18, 0.0  ;;  %v217_v30 = vadd.f32 %v384_v1, %v197_v19  ;;  %v186_v42 = vld [vmem:[%s379_s19 + $0x78] sm:$0xff] }
  0x14   : > { %v230_v34 = vmax.f32 %v214_v20, 0.0  ;;  %v231_v35 = vmax.f32 %v215_v21, 0.0  ;;  %v218_v36 = vadd.f32 %v384_v1, %v198_v23  ;;  %v232_v38 = vmax.f32 %v216_v22, 0.0 }
  0x15   : > { %243 = vst [vmem:[%s400_s24] sm:$0xff] %v227_v27  ;;  %v199_v39 = vmul.f32 %v335_v0, %v179_v24  ;;  %v200_v40 = vmul.f32 %v335_v0, %v180_v25  ;;  %v201_v41 = vmul.f32 %v335_v0, %v181_v26  ;;  %v233_v43 = vmax.f32 %v217_v30, 0.0 }
  0x16   : > { %244 = vst [vmem:[%s400_s24 + $0x8] sm:$0xff] %v228_v28  ;;  %v202_v44 = vmul.f32 %v335_v0, %v182_v31  ;;  %v203_v45 = vmul.f32 %v335_v0, %v183_v32  ;;  %v204_v46 = vmul.f32 %v335_v0, %v184_v33  ;;  %v205_v50 = vmul.f32 %v335_v0, %v185_v37 }
  0x17   : > { %245 = vst [vmem:[%s400_s24 + $0x10] sm:$0xff] %v229_v29  ;;  %v219_v47 = vadd.f32 %v384_v1, %v199_v39  ;;  %v220_v48 = vadd.f32 %v384_v1, %v200_v40  ;;  %v221_v49 = vadd.f32 %v384_v1, %v201_v41  ;;  %v234_v51 = vmax.f32 %v218_v36, 0.0 }
  0x18   : > { %246 = vst [vmem:[%s400_s24 + $0x18] sm:$0xff] %v230_v34  ;;  %v222_v52 = vadd.f32 %v384_v1, %v202_v44  ;;  %v206_v53 = vmul.f32 %v335_v0, %v186_v42  ;;  %v223_v55 = vadd.f32 %v384_v1, %v203_v45  ;;  %v224_v57 = vadd.f32 %v384_v1, %v204_v46 }
  0x19   : > { %247 = vst [vmem:[%s400_s24 + $0x20] sm:$0xff] %v231_v35  ;;  %v235_v54 = vmax.f32 %v219_v47, 0.0  ;;  %v236_v56 = vmax.f32 %v220_v48, 0.0  ;;  %v237_v58 = vmax.f32 %v221_v49, 0.0  ;;  %v225_v59 = vadd.f32 %v384_v1, %v205_v50 }
  0x1a   : > { %248 = vst [vmem:[%s400_s24 + $0x28] sm:$0xff] %v232_v38  ;;  %v238_v60 = vmax.f32 %v222_v52, 0.0  ;;  %v226_v61 = vadd.f32 %v384_v1, %v206_v53  ;;  %v239_v62 = vmax.f32 %v223_v55, 0.0  ;;  %v240_v63 = vmax.f32 %v224_v57, 0.0 }
  0x1b   : > { %249 = vst [vmem:[%s400_s24 + $0x30] sm:$0xff] %v233_v43  ;;  %v241_v0 = vmax.f32 %v225_v59, 0.0 }
  0x1c   : > { %250 = vst [vmem:[%s400_s24 + $0x38] sm:$0xff] %v234_v51  ;;  %v242_v2 = vmax.f32 %v226_v61, 0.0 }
  0x1d   : > { %251 = vst [vmem:[%s400_s24 + $0x40] sm:$0xff] %v235_v54 }
  0x1e   : > { %252 = vst [vmem:[%s400_s24 + $0x48] sm:$0xff] %v236_v56 }
  0x1f   : > { %253 = vst [vmem:[%s400_s24 + $0x50] sm:$0xff] %v237_v58 }
  0x20   : > { %254 = vst [vmem:[%s400_s24 + $0x58] sm:$0xff] %v238_v60 }
  0x21   : > { %255 = vst [vmem:[%s400_s24 + $0x60] sm:$0xff] %v239_v62 }
  0x22   : > { %256 = vst [vmem:[%s400_s24 + $0x68] sm:$0xff] %v240_v63 }
  0x23   : > { %257 = vst [vmem:[%s400_s24 + $0x70] sm:$0xff] %v241_v0 }
  0x24   : > { %258 = vst [vmem:[%s400_s24 + $0x78] sm:$0xff] %v242_v2 }
  0x25 PF: > { %s13_s12 = sadd.s32 1, %s343_s12  }
  0x26   : > { %p10_p4 = scmp.ge.s32.totalorder %s13_s12, 6  }
  0x28   :  { %12 = sbr.rel (!%p10_p4) target bundleno = 1 (0x1), region = 62 }

// kernel: _lambda_.4
= control target key start
LH: loop header
LB: loop body
LE: loop exit
PB: predicated region body
PF: predicated region fallthrough
CT: control target
= control target key end

     0   :  { %s2598_s12 = smov 0   ;;  %s3313_s0 = inlined_call_operand.vmem [shape: bf16[4,10,18,128], index: 0, kind: input, shape index: {}]   ;;  %s3314_s1 = inlined_call_operand.vmem [shape: bf16[9,128,128], index: 1, kind: input, shape index: {}]   ;;  %s3315_s2 = inlined_call_operand.vmem [shape: f32[4,8,16,128], index: 2, kind: output, shape index: {0}]   ;;  %s3316_s3 = inlined_call_operand.vmem [shape: f32[4,2,128], index: 3, kind: output, shape index: {1}]  }
   0x1 LB: > { %s1977_s13 = sadd.s32 4294967295, %s2576_s12   ;;  %p1981_p0 = scmp.ge.s32.totalorder %s2576_s12, 1  ;;  %s2576_s12 = sphi %s2598_s12, %s14_s12  }
   0x2   : > { %p140_p1 = scmp.lt.s32.totalorder %s2576_s12, 5 }
   0x4   : > { %p141_p2 = pnand %p1981_p0, %p140_p1 }
   0x5   : > { %p168_p3 = scmp.lt.s32.totalorder (!%p141_p2), %s1977_s13, 3 }
   0x6   : > { %144 = sbr.rel (%p141_p2) target bundleno = 478 (0x1de), region = 28 }
   0xb   : > { %v2480_v0 = vld [vmem:[%s3314_s1 + $0x78] sm:$0xff]  ;;  %v2479_v1 = vld [vmem:[%s3314_s1 + $0x70] sm:$0xff]  ;;  %s3322_s13 = smov (!%p168_p3, %s1977_s13), 3  ;;  %v2478_v2 = vld [vmem:[%s3314_s1 + $0x68] sm:$0xff]  ;;  %vm228_vm0 = vsmask.f32 3328 }
   0xc   : > { %2537 = vmatpush.bf16.msra.mxu1 %v2480_v0  ;;  %2538 = vmatpush.bf16.msra.mxu2 %v2480_v0  ;;  %s2561_s18 = smul.u32 120, %s3322_s13  ;;  %vm229_vm1 = vsmask.f32 7440  ;;  %v2477_v6 = vld [vmem:[%s3314_s1 + $0x60] sm:$0xff]  ;;  %v2476_v35 = vld [vmem:[%s3314_s1 + $0x58] sm:$0xff]  ;;  %v2475_v54 = vld [vmem:[%s3314_s1 + $0x50] sm:$0xff] }
   0xd   : > { %2539 = vmatpush.bf16.msra.mxu3 %v2480_v0  ;;  %520 = vmatpush.bf16.msra.mxu0 %v2480_v0  ;;  %vm2662_vm2 = vmor %vm228_vm0, %vm229_vm1  ;;  %vm722_vm3 = vcmask 1042432   ;;  %vm723_vm4 = vcmask 1046532   ;;  %s1985_s20 = sshll.u32 %s3322_s13, 1 }
   0xe   : > { %s2621_s23 = scalar_lea.vmem %s3313_s0, %s2561_s18  ;;  %vm2886_vm5 = vmor %vm722_vm3, %vm723_vm4  ;;  %s181_s24 = scalar_lea.vmem %s3316_s3, %s1985_s20 }
   0xf   : > { %v2624_v3 = vld [vmem:[%s2621_s23 + $0x18] sm:$0xf]  ;;  %v2627_v4 = vld [vmem:[%s2621_s23 + $0x1c] sm:$0xf]  ;;  %v2630_v5 = vld [vmem:[%s2621_s23 + $0x20] sm:$0x1] }
  0x10   : > { %2540 = vmatpush.bf16.msra.mxu1 %v2479_v1  ;;  %2541 = vmatpush.bf16.msra.mxu2 %v2479_v1  ;;  %v280_v7 = vshrl.u32 %v2624_v3, 16  ;;  %v283_v8 = vshll.u32 %v2624_v3, 16  ;;  %v289_v9 = vshll.u32 %v2627_v4, 16  ;;  %v293_v10 = vshrl.u32 %v2627_v4, 16  ;;  %v2640_v11 = vld [vmem:[%s2621_s23 + $0x30] sm:$0xf] }
  0x11   : > { %2542 = vmatpush.bf16.msra.mxu3 %v2479_v1  ;;  %521 = vmatpush.bf16.msra.mxu0 %v2479_v1  ;;  %v299_v12 = vshll.u32 %v2630_v5, 16  ;;  %v2644_v13 = vld [vmem:[%s2621_s23 + $0x34] sm:$0xf]  ;;  %v2647_v14 = vld [vmem:[%s2621_s23 + $0x38] sm:$0x1]  ;;  %v328_v15 = vshrl.u32 %v2640_v11, 16 }
  0x12   : > { %v282_v16 = vrot.slane %v280_v7, 4  ;;  %v285_v17 = vrot.slane %v283_v8, 5  ;;  %v291_v18 = vrot.slane %v289_v9, 5  ;;  %v295_v19 = vrot.slane %v293_v10, 4  ;;  %v2651_v20 = vld [vmem:[%s2621_s23 + $0x48] sm:$0xf] }
  0x13   : > { %v301_v21 = vrot.slane %v299_v12, 5  ;;  %v330_v22 = vrot.slane %v328_v15, 4  ;;  %v331_v23 = vshll.u32 %v2640_v11, 16  ;;  %v337_v24 = vshll.u32 %v2644_v13, 16  ;;  %v2658_v29 = vld [vmem:[%s2621_s23 + $0x4c] sm:$0xf] }
  0x14   : > { %2543 = vmatpush.bf16.msra.mxu1 %v2478_v2  ;;  %2544 = vmatpush.bf16.msra.mxu2 %v2478_v2  ;;  %v286_v25 = vor.u32 %v285_v17, %v282_v16  ;;  %v296_v26 = vor.u32 %v295_v19, %v291_v18  ;;  %v341_v27 = vshrl.u32 %v2644_v13, 16  ;;  %v347_v28 = vshll.u32 %v2647_v14, 16  ;;  %v2672_v41 = vld [vmem:[%s2621_s23 + $0x50] sm:$0x1]  ;;  %v2681_v49 = vld [vmem:[%s2621_s23] sm:$0xf] }
  0x15   : > { %2545 = vmatpush.bf16.msra.mxu3 %v2478_v2  ;;  %522 = vmatpush.bf16.msra.mxu0 %v2478_v2  ;;  %v333_v31 = vrot.slane %v331_v23, 5  ;;  %v339_v32 = vrot.slane %v337_v24, 5  ;;  %v376_v33 = vshrl.u32 %v2651_v20, 16  ;;  %v379_v34 = vshll.u32 %v2651_v20, 16  ;;  %v2692_v62 = vld [vmem:[%s2621_s23 + $0x4] sm:$0xf] }
  0x16   : > { %v287_v36 = vrot.slane %v286_v25, 4  ;;  %v297_v37 = vrot.slane %v296_v26, 4  ;;  %v343_v38 = vrot.slane %v341_v27, 4  ;;  %v349_v39 = vrot.slane %v347_v28, 5  ;;  %v2698_v7 = vld [vmem:[%s2621_s23 + $0x8] sm:$0x1] }
  0x17   : > { %v334_v40 = vor.u32 %v333_v31, %v330_v22  ;;  %v378_v42 = vrot.slane %v376_v33, 4  ;;  %v381_v43 = vrot.slane %v379_v34, 5  ;;  %v385_v44 = vshll.u32 %v2658_v29, 16  ;;  %v2701_v8 = vld [vmem:[%s2621_s23 + $0x24] sm:$0xf]  ;;  %v2474_v16 = vld [vmem:[%s3314_s1 + $0x48] sm:$0xff] }
  0x18   : > { %2546 = vmatpush.bf16.msra.mxu1 %v2477_v6  ;;  %2547 = vmatpush.bf16.msra.mxu2 %v2477_v6  ;;  %v292_v45 = vsel %vm2662_vm2, %v287_v36, %v291_v18  ;;  %v302_v46 = vsel %vm2662_vm2, %v297_v37, %v301_v21  ;;  %v344_v47 = vor.u32 %v343_v38, %v339_v32  ;;  %v389_v48 = vshrl.u32 %v2658_v29, 16  ;;  %v2712_v22 = vld [vmem:[%s2621_s23 + $0x28] sm:$0xf]  ;;  %v2718_v26 = vld [vmem:[%s2621_s23 + $0x2c] sm:$0x1] }
  0x19   : > { %2548 = vmatpush.bf16.msra.mxu3 %v2477_v6  ;;  %523 = vmatpush.bf16.msra.mxu0 %v2477_v6  ;;  %v444_v50 = vunpack.c.l.b16 %v292_v45  ;;  %v445_v51 = vunpack.c.l.b16 %v302_v46  ;;  %v335_v52 = vrot.slane %v334_v40, 4  ;;  %v382_v53 = vor.u32 %v381_v43, %v378_v42  ;;  %v2725_v34 = vld [vmem:[%s2621_s23 + $0x3c] sm:$0xf] }
  0x1a   : > { %v345_v55 = vrot.slane %v344_v47, 4  ;;  %v387_v56 = vrot.slane %v385_v44, 5  ;;  %v391_v57 = vrot.slane %v389_v48, 4  ;;  %v395_v58 = vshll.u32 %v2672_v41, 16  ;;  %v2488_v46 = vld [vmem:[%s3314_s1 + $0xb8] sm:$0xff] }
  0x1b   : > { %v2687_v59 = vpack.c.b16 %v445_v51, %v444_v50  ;;  %v340_v60 = vsel %vm2662_vm2, %v335_v52, %v339_v32  ;;  %v383_v61 = vrot.slane %v382_v53, 4  ;;  %v232_v63 = vshrl.u32 %v2681_v49, 16  ;;  %v2739_v50 = vld [vmem:[%s2621_s23 + $0x40] sm:$0xf]  ;;  %v2472_v52 = vld [vmem:[%s3314_s1 + $0x38] sm:$0xff] }
  0x1c   : > { %2549 = vmatpush.bf16.msra.mxu1 %v2476_v35  ;;  %2550 = vmatpush.bf16.msra.mxu2 %v2476_v35  ;;  %v350_v0 = vsel %vm2662_vm2, %v345_v55, %v349_v39  ;;  %v448_v1 = vunpack.c.l.b16 %v340_v60  ;;  %v392_v2 = vor.u32 %v391_v57, %v387_v56  ;;  %v397_v6 = vrot.slane %v395_v58, 5  ;;  %v2473_v39 = vld [vmem:[%s3314_s1 + $0x40] sm:$0xff] }
  0x1d   : > { %2551 = vmatpush.bf16.msra.mxu3 %v2476_v35  ;;  %524 = vmatpush.bf16.msra.mxu0 %v2476_v35  ;;  %v449_v9 = vunpack.c.l.b16 %v350_v0  ;;  %v388_v10 = vsel %vm2662_vm2, %v383_v61, %v387_v56  ;;  %v234_v12 = vrot.slane %v232_v63, 4  ;;  %v235_v15 = vshll.u32 %v2681_v49, 16  ;;  %v2746_v57 = vld [vmem:[%s2621_s23 + $0x44] sm:$0x1]  ;;  %v2752_v0 = vld [vmem:[%s2621_s23 + $0x54] sm:$0xf] }
  0x1e   : > { %v393_v17 = vrot.slane %v392_v2, 4  ;;  %v452_v18 = vunpack.c.l.b16 %v388_v10  ;;  %v241_v19 = vshll.u32 %v2692_v62, 16  ;;  %v245_v21 = vshrl.u32 %v2692_v62, 16 }
  0x1f   : > { %v2714_v23 = vpack.c.b16 %v449_v9, %v448_v1  ;;  %v237_v24 = vrot.slane %v235_v15, 5  ;;  %v251_v25 = vshll.u32 %v2698_v7, 16  ;;  %v304_v27 = vshrl.u32 %v2701_v8, 16 }
  0x20   : > { %2552 = vmatpush.bf16.msra.mxu1 %v2475_v54  ;;  %2553 = vmatpush.bf16.msra.mxu2 %v2475_v54  ;;  %v398_v28 = vsel %vm2662_vm2, %v393_v17, %v397_v6  ;;  %v243_v31 = vrot.slane %v241_v19, 5  ;;  %v247_v32 = vrot.slane %v245_v21, 4  ;;  %v307_v33 = vshll.u32 %v2701_v8, 16  ;;  %v2504_v6 = vld [vmem:[%s3314_s1 + $0x138] sm:$0xff]  ;;  %v2471_v21 = vld [vmem:[%s3314_s1 + $0x30] sm:$0xff] }
  0x21   : > { %2554 = vmatpush.bf16.msra.mxu3 %v2475_v54  ;;  %525 = vmatpush.bf16.msra.mxu0 %v2475_v54  ;;  %v453_v35 = vunpack.c.l.b16 %v398_v28  ;;  %v238_v36 = vor.u32 %v237_v24, %v234_v12  ;;  %v253_v37 = vrot.slane %v251_v25, 5  ;;  %v306_v38 = vrot.slane %v304_v27, 4  ;;  %v2496_v12 = vld [vmem:[%s3314_s1 + $0xf8] sm:$0xff] }
  0x22   : > { %v248_v40 = vor.u32 %v247_v32, %v243_v31  ;;  %v309_v42 = vrot.slane %v307_v33, 5  ;;  %v313_v43 = vshll.u32 %v2712_v22, 16  ;;  %v317_v44 = vshrl.u32 %v2712_v22, 16  ;;  %v2774_v28 = vld [vmem:[%s2621_s23 + $0x58] sm:$0xf] }
  0x23   : > { %v2732_v45 = vpack.c.b16 %v453_v35, %v452_v18  ;;  %v239_v47 = vrot.slane %v238_v36, 4  ;;  %v323_v48 = vshll.u32 %v2718_v26, 16  ;;  %v352_v51 = vshrl.u32 %v2725_v34, 16  ;;  %v2780_v36 = vld [vmem:[%s2621_s23 + $0x5c] sm:$0x1] }
  0x24   : > { %2555 = vmatpush.bf16.msra.mxu1 %v2474_v16  ;;  %2556 = vmatpush.bf16.msra.mxu2 %v2474_v16  ;;  %v249_v53 = vrot.slane %v248_v40, 4  ;;  %v310_v54 = vor.u32 %v309_v42, %v306_v38  ;;  %v315_v55 = vrot.slane %v313_v43, 5  ;;  %v319_v56 = vrot.slane %v317_v44, 4  ;;  %v2503_v38 = vld [vmem:[%s3314_s1 + $0x130] sm:$0xff] }
  0x25   : > { %2557 = vmatpush.bf16.msra.mxu3 %v2474_v16  ;;  %526 = vmatpush.bf16.msra.mxu0 %v2474_v16  ;;  %v244_v58 = vsel %vm2662_vm2, %v239_v47, %v243_v31  ;;  %v325_v60 = vrot.slane %v323_v48, 5  ;;  %v354_v61 = vrot.slane %v352_v51, 4  ;;  %v355_v63 = vshll.u32 %v2725_v34, 16  ;;  %v2487_v16 = vld [vmem:[%s3314_s1 + $0xb0] sm:$0xff] }
  0x26   : > { %v254_v1 = vsel %vm2662_vm2, %v249_v53, %v253_v37  ;;  %v440_v2 = vunpack.c.l.b16 %v244_v58  ;;  %v311_v9 = vrot.slane %v310_v54, 4  ;;  %v320_v10 = vor.u32 %v319_v56, %v315_v55  ;;  %v2783_v37 = vld [vmem:[%s2621_s23 + $0xc] sm:$0xf]  ;;  %v2495_v44 = vld [vmem:[%s3314_s1 + $0xf0] sm:$0xff] }
  0x27   : > { %v441_v15 = vunpack.c.l.b16 %v254_v1  ;;  %v357_v17 = vrot.slane %v355_v63, 5  ;;  %v361_v18 = vshll.u32 %v2739_v50, 16  ;;  %v365_v19 = vshrl.u32 %v2739_v50, 16  ;;  %v2470_v53 = vld [vmem:[%s3314_s1 + $0x28] sm:$0xff]  ;;  %v2807_v58 = vld [vmem:[%s2621_s23 + $0x10] sm:$0xf] }
  0x28   : > { %2558 = vmatpush.bf16.msra.mxu1 %v2473_v39  ;;  %2559 = vmatpush.bf16.msra.mxu2 %v2473_v39  ;;  %v316_v24 = vsel %vm2662_vm2, %v311_v9, %v315_v55  ;;  %v321_v25 = vrot.slane %v320_v10, 4  ;;  %v371_v27 = vshll.u32 %v2746_v57, 16  ;;  %v400_v31 = vshrl.u32 %v2752_v0, 16  ;;  %v2502_v9 = vld [vmem:[%s3314_s1 + $0x128] sm:$0xff] }
  0x29   : > { %2560 = vmatpush.bf16.msra.mxu3 %v2473_v39  ;;  %527 = vmatpush.bf16.msra.mxu0 %v2473_v39  ;;  %v456_v32 = vpack.c.b16 %v441_v15, %v440_v2  ;;  %v358_v33 = vor.u32 %v357_v17, %v354_v61  ;;  %v363_v35 = vrot.slane %v361_v18, 5  ;;  %v2791_v40 = vunpack.c.l.b16 %v316_v24  ;;  %v2494_v17 = vld [vmem:[%s3314_s1 + $0xe8] sm:$0xff] }
  0x2a   : > { %v326_v39 = vsel %vm2662_vm2, %v321_v25, %v325_v60  ;;  %v367_v42 = vrot.slane %v365_v19, 4  ;;  %v373_v43 = vrot.slane %v371_v27, 5  ;;  %v402_v48 = vrot.slane %v400_v31, 4  ;;  %v2485_v25 = vld [vmem:[%s3314_s1 + $0xa0] sm:$0xff] }
  0x2b   : > { %538 = vmatmul.bf16.vlgmr.msra.gmra.mxu1 %v2687_v59  ;;  %548 = vmatmul.bf16.vlgmr.msra.gmra.mxu2 %v2714_v23  ;;  %v359_v47 = vrot.slane %v358_v33, 4  ;;  %v403_v51 = vshll.u32 %v2752_v0, 16  ;;  %v413_v55 = vshrl.u32 %v2774_v28, 16  ;;  %v419_v56 = vshll.u32 %v2780_v36, 16  ;;  %v2469_v27 = vld [vmem:[%s3314_s1 + $0x20] sm:$0xff] }
  0x2c   : > { %878 = vmatpush.bf16.msrb.mxu2 %v2488_v46  ;;  %665 = vmatpush.bf16.msrb.mxu1 %v2472_v52  ;;  %v2486_v46 = vld [vmem:[%s3314_s1 + $0xa8] sm:$0xff]  ;;  %v409_v52 = vshll.u32 %v2774_v28, 16  ;;  %v368_v54 = vor.u32 %v367_v42, %v363_v35  ;;  %v256_v60 = vshrl.u32 %v2783_v37, 16  ;;  %v447_v61 = vunpack.c.l.b16 %v326_v39 }
  0x2d   : > { %558 = vmatmul.bf16.vlgmr.msra.gmra.mxu3 %v2732_v45  ;;  %1172 = vmatpush.bf16.msrb.mxu0 %v2504_v6  ;;  %v364_v63 = vsel %vm2662_vm2, %v359_v47, %v363_v35  ;;  %v405_v1 = vrot.slane %v403_v51, 5  ;;  %v2813_v6 = vld [vmem:[%s2621_s23 + $0x14] sm:$0x1]  ;;  %v415_v15 = vrot.slane %v413_v55, 4  ;;  %v265_v24 = vshll.u32 %v2807_v58, 16  ;;  %v2484_v55 = vld [vmem:[%s3314_s1 + $0x98] sm:$0xff] }
  0x2e   : > { %1014 = vmatpush.bf16.msrb.mxu3 %v2496_v12  ;;  %528 = vmatmul.bf16.vlgmr.msra.gmra.mxu0 %v456_v32  ;;  %v411_v2 = vrot.slane %v409_v52, 5  ;;  %v369_v10 = vrot.slane %v368_v54, 4  ;;  %v450_v12 = vunpack.c.l.b16 %v364_v63  ;;  %v258_v19 = vrot.slane %v256_v60, 4 }
  0x2f   : > { %v406_v18 = vor.u32 %v405_v1, %v402_v48  ;;  %v269_v33 = vshrl.u32 %v2807_v58, 16  ;;  %v275_v35 = vshll.u32 %v2813_v6, 16  ;;  %v2850_v1 = vpack.c.b16 %v447_v61, %v2791_v40  ;;  %v2492_v40 = vld [vmem:[%s3314_s1 + $0xd8] sm:$0xff] }
  0x30   : > { %879 = vmatpush.bf16.msrb.mxu2 %v2487_v16  ;;  %666 = vmatpush.bf16.msrb.mxu1 %v2471_v21  ;;  %v421_v16 = vrot.slane %v419_v56, 5  ;;  %v259_v21 = vshll.u32 %v2783_v37, 16  ;;  %v374_v31 = vsel %vm2662_vm2, %v369_v10, %v373_v43  ;;  %v416_v32 = vor.u32 %v415_v15, %v411_v2  ;;  %v2493_v43 = vld [vmem:[%s3314_s1 + $0xe0] sm:$0xff]  ;;  %v2468_v56 = vld [vmem:[%s3314_s1 + $0x18] sm:$0xff] }
  0x31   : > { %1173 = vmatpush.bf16.msrb.mxu0 %v2503_v38  ;;  %v451_v38 = vunpack.c.l.b16 %v374_v31  ;;  %v407_v39 = vrot.slane %v406_v18, 4  ;;  %v271_v48 = vrot.slane %v269_v33, 4  ;;  %v277_v63 = vrot.slane %v275_v35, 5  ;;  %v2491_v35 = vld [vmem:[%s3314_s1 + $0xd0] sm:$0xff] }
  0x32   : > { %1015 = vmatpush.bf16.msrb.mxu3 %v2495_v44  ;;  %v261_v42 = vrot.slane %v259_v21, 5  ;;  %v267_v44 = vrot.slane %v265_v24, 5  ;;  %v417_v47 = vrot.slane %v416_v32, 4  ;;  %v2467_v21 = vld [vmem:[%s3314_s1 + $0x10] sm:$0xff]  ;;  %v730_v32 = vrot.slane %v2698_v7, 5  ;;  %v2466_v7 = vld [vmem:[%s3314_s1 + $0x8] sm:$0xff] }
  0x33   : > { %v412_v51 = vsel %vm2662_vm2, %v407_v39, %v411_v2  ;;  %v2852_v2 = vpack.c.b16 %v451_v38, %v450_v12  ;;  %v2498_v39 = vld [vmem:[%s3314_s1 + $0x108] sm:$0xff] }
  0x34   : > { %880 = vmatpush.bf16.msrb.mxu2 %v2486_v46  ;;  %667 = vmatpush.bf16.msrb.mxu1 %v2470_v53  ;;  %v2501_v46 = vld [vmem:[%s3314_s1 + $0x120] sm:$0xff]  ;;  %v262_v52 = vor.u32 %v261_v42, %v258_v19  ;;  %v422_v53 = vsel %vm2662_vm2, %v417_v47, %v421_v16  ;;  %v454_v54 = vunpack.c.l.b16 %v412_v51  ;;  %v272_v60 = vor.u32 %v271_v48, %v267_v44  ;;  %v2500_v16 = vld [vmem:[%s3314_s1 + $0x118] sm:$0xff] }
  0x35   : > { %1174 = vmatpush.bf16.msrb.mxu0 %v2502_v9  ;;  %v455_v9 = vunpack.c.l.b16 %v422_v53  ;;  %v2481_v47 = vld [vmem:[%s3314_s1 + $0x80] sm:$0xff]  ;;  %v2512_v53 = vld [vmem:[%s3314_s1 + $0x178] sm:$0xff] }
  0x36   : > { %1016 = vmatpush.bf16.msrb.mxu3 %v2494_v17  ;;  %v263_v10 = vrot.slane %v262_v52, 4  ;;  %v273_v15 = vrot.slane %v272_v60, 4  ;;  %v727_v17 = vrot.slane %v2692_v62, 5  ;;  %v2483_v62 = vld [vmem:[%s3314_s1 + $0x90] sm:$0xff]  ;;  %v2465_v48 = vld [vmem:[%s3314_s1] sm:$0xff]  ;;  %v2520_v52 = vld [vmem:[%s3314_s1 + $0x1b8] sm:$0xff] }
  0x37   : > { %v2858_v18 = vpack.c.b16 %v455_v9, %v454_v54  ;;  %v2497_v54 = vld [vmem:[%s3314_s1 + $0x100] sm:$0xff]  ;;  %v2536_v60 = vld [vmem:[%s3314_s1 + $0x238] sm:$0xff]  ;;  %v2100_v9 = vrot.slane %v2624_v3, 9 }
  0x38   : > { %881 = vmatpush.bf16.msrb.mxu2 %v2485_v25  ;;  %668 = vmatpush.bf16.msrb.mxu1 %v2469_v27  ;;  %v268_v61 = vsel %vm2662_vm2, %v263_v10, %v267_v44  ;;  %v278_v12 = vsel %vm2662_vm2, %v273_v15, %v277_v63  ;;  %v2499_v25 = vld [vmem:[%s3314_s1 + $0x110] sm:$0xff]  ;;  %v2098_v27 = vrot.slane %v2681_v49, 9  ;;  %v729_v31 = vrot.slane %v727_v17, 4  ;;  %v2482_v49 = vld [vmem:[%s3314_s1 + $0x88] sm:$0xff]  ;;  %v2528_v63 = vld [vmem:[%s3314_s1 + $0x1f8] sm:$0xff] }
  0x39   : > { %1175 = vmatpush.bf16.msrb.mxu0 %v2501_v46  ;;  %v442_v19 = vunpack.c.l.b16 %v268_v61  ;;  %v443_v24 = vunpack.c.l.b16 %v278_v12  ;;  %v2490_v46 = vld [vmem:[%s3314_s1 + $0xc8] sm:$0xff]  ;;  %v2455_v15 = vld [vmem:[%s2621_s23] sm:$0xff]  ;;  %v2519_v61 = vld [vmem:[%s3314_s1 + $0x1b0] sm:$0xff] }
  0x3a   : > { %1017 = vmatpush.bf16.msrb.mxu3 %v2493_v43  ;;  %v728_v42 = vsel %vm2886_vm5, %v2098_v27, %v727_v17  ;;  %v731_v44 = vsel %vm2886_vm5, %v729_v31, %v730_v32  ;;  %v2456_v17 = vld [vmem:[%s2621_s23 + $0xc] sm:$0xff]  ;;  %v737_v31 = vrot.slane %v2813_v6, 5 }
  0x3b   : > { %543 = vmatmul.bf16.gmra.mxu1 %v2850_v1  ;;  %553 = vmatmul.bf16.gmra.mxu2 %v2852_v2  ;;  %v2881_v33 = vpack.c.b16 %v443_v24, %v442_v19  ;;  %v798_v43 = vunpack.c.l.b16 %v728_v42  ;;  %v799_v51 = vunpack.c.l.b16 %v731_v44  ;;  %v2518_v32 = vld [vmem:[%s3314_s1 + $0x1a8] sm:$0xff]  ;;  %v748_v42 = vrot.slane %v2712_v22, 5  ;;  %v2517_v22 = vld [vmem:[%s3314_s1 + $0x1a0] sm:$0xff] }
  0x3c   : > { %882 = vmatpush.bf16.msrb.mxu2 %v2484_v55  ;;  %669 = vmatpush.bf16.msrb.mxu1 %v2468_v56  ;;  %v741_v55 = vrot.slane %v2627_v4, 5  ;;  %v2489_v56 = vld [vmem:[%s3314_s1 + $0xc0] sm:$0xff]  ;;  %v744_v4 = vrot.slane %v2630_v5, 5  ;;  %v2511_v5 = vld [vmem:[%s3314_s1 + $0x170] sm:$0xff]  ;;  %v2534_v6 = vld [vmem:[%s3314_s1 + $0x228] sm:$0xff]  ;;  %v2101_v44 = vrot.slane %v2701_v8, 9 }
  0x3d   : > { %563 = vmatmul.bf16.gmra.mxu3 %v2858_v18  ;;  %1176 = vmatpush.bf16.msrb.mxu0 %v2500_v16  ;;  %v814_v16 = vpack.c.b16 %v799_v51, %v798_v43  ;;  %v2980_v43 = vld [vmem:[%s2621_s23 + $0x18] sm:$0xff] }
  0x3e   : > { %1018 = vmatpush.bf16.msrb.mxu3 %v2492_v40  ;;  %533 = vmatmul.bf16.gmra.mxu0 %v2881_v33  ;;  %v743_v10 = vrot.slane %v741_v55, 4  ;;  %v734_v40 = vrot.slane %v2807_v58, 5  ;;  %v742_v12 = vsel %vm2886_vm5, %v2100_v9, %v741_v55  ;;  %v2535_v58 = vld [vmem:[%s3314_s1 + $0x230] sm:$0xff]  ;;  %v749_v51 = vsel %vm2886_vm5, %v2101_v44, %v748_v42  ;;  %v2509_v55 = vld [vmem:[%s3314_s1 + $0x160] sm:$0xff]  ;;  %v2524_v9 = vld [vmem:[%s3314_s1 + $0x1d8] sm:$0xff] }
  0x3f   : > { %v802_v19 = vunpack.c.l.b16 %v742_v12  ;;  %v2515_v12 = vld [vmem:[%s3314_s1 + $0x190] sm:$0xff]  ;;  %v2104_v44 = vrot.slane %v2651_v20, 9 }
  0x40   : > { %883 = vmatpush.bf16.msrb.mxu2 %v2483_v62  ;;  %670 = vmatpush.bf16.msrb.mxu1 %v2467_v21  ;;  %v745_v3 = vsel %vm2886_vm5, %v743_v10, %v744_v4  ;;  %v2527_v21 = vld [vmem:[%s3314_s1 + $0x1f0] sm:$0xff]  ;;  %v736_v27 = vrot.slane %v734_v40, 4  ;;  %v2508_v10 = vld [vmem:[%s3314_s1 + $0x158] sm:$0xff] }
  0x41   : > { %1177 = vmatpush.bf16.msrb.mxu0 %v2499_v25  ;;  %v803_v62 = vunpack.c.l.b16 %v745_v3  ;;  %v2099_v25 = vrot.slane %v2783_v37, 9  ;;  %v2510_v37 = vld [vmem:[%s3314_s1 + $0x168] sm:$0xff]  ;;  %v2532_v4 = vld [vmem:[%s3314_s1 + $0x218] sm:$0xff]  ;;  %v2507_v3 = vld [vmem:[%s3314_s1 + $0x150] sm:$0xff] }
  0x42   : > { %1019 = vmatpush.bf16.msrb.mxu3 %v2491_v35  ;;  %v2526_v35 = vld [vmem:[%s3314_s1 + $0x1e8] sm:$0xff] }
  0x43   : > { %v2953_v24 = vpack.c.b16 %v803_v62, %v802_v19 }
  0x44   : > { %884 = vmatpush.bf16.msrb.mxu2 %v2482_v49  ;;  %671 = vmatpush.bf16.msrb.mxu1 %v2466_v7  ;;  %v735_v49 = vsel %vm2886_vm5, %v2099_v25, %v734_v40  ;;  %v738_v7 = vsel %vm2886_vm5, %v736_v27, %v737_v31  ;;  %v762_v25 = vrot.slane %v2739_v50, 5  ;;  %v2103_v27 = vrot.slane %v2725_v34, 9  ;;  %v2522_v50 = vld [vmem:[%s3314_s1 + $0x1c8] sm:$0xff] }
  0x45   : > { %1178 = vmatpush.bf16.msrb.mxu0 %v2498_v39  ;;  %v801_v39 = vunpack.c.l.b16 %v738_v7 }
  0x46   : > { %1020 = vmatpush.bf16.msrb.mxu3 %v2490_v46  ;;  %v750_v46 = vrot.slane %v748_v42, 4  ;;  %v764_v31 = vrot.slane %v762_v25, 4  ;;  %v763_v34 = vsel %vm2886_vm5, %v2103_v27, %v762_v25  ;;  %v769_v42 = vrot.slane %v2658_v29, 5  ;;  %v2521_v29 = vld [vmem:[%s3314_s1 + $0x1c0] sm:$0xff] }
  0x48   : > { %885 = vmatpush.bf16.msrb.mxu2 %v2481_v47  ;;  %672 = vmatpush.bf16.msrb.mxu1 %v2465_v48  ;;  %v751_v47 = vrot.slane %v2718_v26, 5  ;;  %v2525_v26 = vld [vmem:[%s3314_s1 + $0x1e0] sm:$0xff]  ;;  %v770_v20 = vsel %vm2886_vm5, %v2104_v44, %v769_v42 }
  0x49   : > { %1179 = vmatpush.bf16.msrb.mxu0 %v2497_v54 }
  0x4a   : > { %1021 = vmatpush.bf16.msrb.mxu3 %v2489_v56  ;;  %v2533_v56 = vld [vmem:[%s3314_s1 + $0x220] sm:$0xff] }
  0x4b   : > { %673 = vmatmul.bf16.vlgmr.msrb.gmra.mxu1 %v2455_v15  ;;  %886 = vmatmul.bf16.vlgmr.msrb.gmra.mxu2 %v814_v16  ;;  %v3023_v15 = vld [vmem:[%s2621_s23 + $0x30] sm:$0xff]  ;;  %v755_v16 = vrot.slane %v2644_v13, 5 }
  0x4c   : > { %1450 = vmatpush.bf16.msra.mxu2 %v2520_v52  ;;  %1314 = vmatpush.bf16.msra.mxu1 %v2512_v53  ;;  %v752_v52 = vsel %vm2886_vm5, %v750_v46, %v751_v47  ;;  %v804_v53 = vunpack.c.l.b16 %v749_v51  ;;  %v2523_v13 = vld [vmem:[%s3314_s1 + $0x1d0] sm:$0xff]  ;;  %v771_v46 = vrot.slane %v769_v42, 4  ;;  %v772_v47 = vrot.slane %v2672_v41, 5  ;;  %v2513_v51 = vld [vmem:[%s3314_s1 + $0x180] sm:$0xff] }
  0x4d   : > { %1750 = vmatpush.bf16.msra.mxu0 %v2536_v60  ;;  %1022 = vmatmul.bf16.vlgmr.msrb.gmra.mxu3 %v2456_v17  ;;  %v805_v54 = vunpack.c.l.b16 %v752_v52  ;;  %v3004_v60 = vld [vmem:[%s2621_s23 + $0x24] sm:$0xff]  ;;  %v757_v40 = vrot.slane %v755_v16, 4 }
  0x4e   : > { %1608 = vmatpush.bf16.msra.mxu3 %v2528_v63  ;;  %1180 = vmatmul.bf16.vlgmr.msrb.gmra.mxu0 %v2881_v33  ;;  %v800_v33 = vunpack.c.l.b16 %v735_v49  ;;  %v2516_v63 = vld [vmem:[%s3314_s1 + $0x198] sm:$0xff]  ;;  %v808_v49 = vunpack.c.l.b16 %v763_v34  ;;  %v2505_v52 = vld [vmem:[%s3314_s1 + $0x140] sm:$0xff]  ;;  %v773_v41 = vsel %vm2886_vm5, %v771_v46, %v772_v47 }
  0x4f   : > { %v2987_v8 = vpack.c.b16 %v805_v54, %v804_v53  ;;  %v3102_v53 = vld [vmem:[%s2621_s23 + $0x60] sm:$0xf]  ;;  %v3105_v54 = vld [vmem:[%s2621_s23 + $0x64] sm:$0xf] }
  0x50   : > { %1451 = vmatpush.bf16.msra.mxu2 %v2519_v61  ;;  %1315 = vmatpush.bf16.msra.mxu1 %v2511_v5  ;;  %v2977_v48 = vpack.c.b16 %v801_v39, %v800_v33  ;;  %v758_v61 = vrot.slane %v2647_v14, 5  ;;  %v3079_v39 = vld [vmem:[%s2621_s23 + $0x48] sm:$0xff] }
  0x51   : > { %1751 = vmatpush.bf16.msra.mxu0 %v2535_v58 }
  0x52   : > { %1609 = vmatpush.bf16.msra.mxu3 %v2527_v21  ;;  %v759_v5 = vsel %vm2886_vm5, %v757_v40, %v758_v61  ;;  %v3051_v21 = vld [vmem:[%s2621_s23 + $0x3c] sm:$0xff]  ;;  %v3120_v40 = vld [vmem:[%s2621_s23 + $0x54] sm:$0xff] }
  0x53   : > { %v807_v19 = vunpack.c.l.b16 %v759_v5  ;;  %v2105_v5 = vrot.slane %v2752_v0, 9 }
  0x54   : > { %1452 = vmatpush.bf16.msra.mxu2 %v2518_v32  ;;  %1316 = vmatpush.bf16.msra.mxu1 %v2510_v37  ;;  %v765_v32 = vrot.slane %v2746_v57, 5  ;;  %v2506_v37 = vld [vmem:[%s3314_s1 + $0x148] sm:$0xff] }
  0x55   : > { %1752 = vmatpush.bf16.msra.mxu0 %v2534_v6  ;;  %v2530_v6 = vld [vmem:[%s3314_s1 + $0x208] sm:$0xff] }
  0x56   : > { %1610 = vmatpush.bf16.msra.mxu3 %v2526_v35  ;;  %v2514_v35 = vld [vmem:[%s3314_s1 + $0x188] sm:$0xff]  ;;  %v766_v57 = vsel %vm2886_vm5, %v764_v31, %v765_v32 }
  0x57   : > { %v809_v7 = vunpack.c.l.b16 %v766_v57 }
  0x58   : > { %1453 = vmatpush.bf16.msra.mxu2 %v2517_v22  ;;  %1317 = vmatpush.bf16.msra.mxu1 %v2509_v55  ;;  %v810_v22 = vunpack.c.l.b16 %v770_v20  ;;  %v1080_v55 = vshrl.u32 %v3102_v53, 16  ;;  %v3155_v20 = vld [vmem:[%s2621_s23 + $0x60] sm:$0xff] }
  0x59   : > { %1753 = vmatpush.bf16.msra.mxu0 %v2533_v56  ;;  %v3076_v33 = vpack.c.b16 %v809_v7, %v808_v49  ;;  %v1083_v56 = vshll.u32 %v3102_v53, 16 }
  0x5a   : > { %1611 = vmatpush.bf16.msra.mxu3 %v2525_v26  ;;  %v811_v26 = vunpack.c.l.b16 %v773_v41  ;;  %v1082_v61 = vrot.slane %v1080_v55, 4 }
  0x5b   : > { %678 = vmatmul.bf16.gmra.mxu1 %v2456_v17  ;;  %891 = vmatmul.bf16.gmra.mxu2 %v2977_v48  ;;  %v2102_v17 = vrot.slane %v2640_v11, 9  ;;  %v2531_v11 = vld [vmem:[%s3314_s1 + $0x210] sm:$0xff] }
  0x5c   : > { %1454 = vmatpush.bf16.msra.mxu2 %v2516_v63  ;;  %1318 = vmatpush.bf16.msra.mxu1 %v2508_v10  ;;  %v1089_v63 = vshll.u32 %v3105_v54, 16  ;;  %v2529_v10 = vld [vmem:[%s3314_s1 + $0x200] sm:$0xff] }
  0x5d   : > { %1027 = vmatmul.bf16.gmra.mxu3 %v2980_v43  ;;  %1754 = vmatpush.bf16.msra.mxu0 %v2532_v4  ;;  %v756_v14 = vsel %vm2886_vm5, %v2102_v17, %v755_v16  ;;  %v3114_v4 = vpack.c.b16 %v811_v26, %v810_v22  ;;  %v776_v16 = vrot.slane %v2774_v28, 5  ;;  %v779_v28 = vrot.slane %v2780_v36, 5 }
  0x5e   : > { %1185 = vmatmul.bf16.gmra.mxu0 %v2687_v59  ;;  %1612 = vmatpush.bf16.msra.mxu3 %v2524_v9  ;;  %v806_v58 = vunpack.c.l.b16 %v756_v14  ;;  %v1093_v9 = vshrl.u32 %v3105_v54, 16 }
  0x60   : > { %1455 = vmatpush.bf16.msra.mxu2 %v2515_v12  ;;  %1319 = vmatpush.bf16.msra.mxu1 %v2507_v3  ;;  %v3048_v62 = vpack.c.b16 %v807_v19, %v806_v58  ;;  %v1085_v12 = vrot.slane %v1083_v56, 5  ;;  %v1095_v3 = vrot.slane %v1093_v9, 4  ;;  %v778_v58 = vrot.slane %v776_v16, 4 }
  0x61   : > { %1755 = vmatpush.bf16.msra.mxu0 %v2531_v11  ;;  %v3123_v11 = vld [vmem:[%s2621_s23 + $0x68] sm:$0x1] }
  0x62   : > { %1613 = vmatpush.bf16.msra.mxu3 %v2523_v13  ;;  %v1091_v13 = vrot.slane %v1089_v63, 5  ;;  %v1086_v19 = vor.u32 %v1085_v12, %v1082_v61  ;;  %v1099_v27 = vshll.u32 %v3123_v11, 16  ;;  %v780_v0 = vsel %vm2886_vm5, %v778_v58, %v779_v28 }
  0x63   : > { %v813_v49 = vunpack.c.l.b16 %v780_v0 }
  0x64   : > { %1456 = vmatpush.bf16.msra.mxu2 %v2514_v35  ;;  %1320 = vmatpush.bf16.msra.mxu1 %v2506_v37  ;;  %v1096_v25 = vor.u32 %v1095_v3, %v1091_v13  ;;  %v777_v35 = vsel %vm2886_vm5, %v2105_v5, %v776_v16  ;;  %v1087_v36 = vrot.slane %v1086_v19, 4  ;;  %v1101_v34 = vrot.slane %v1099_v27, 5 }
  0x65   : > { %1756 = vmatpush.bf16.msra.mxu0 %v2530_v6  ;;  %v812_v6 = vunpack.c.l.b16 %v777_v35 }
  0x66   : > { %1614 = vmatpush.bf16.msra.mxu3 %v2522_v50  ;;  %v1097_v37 = vrot.slane %v1096_v25, 4  ;;  %v1092_v7 = vsel %vm2662_vm2, %v1087_v36, %v1091_v13 }
  0x67   : > { %v3150_v47 = vpack.c.b16 %v813_v49, %v812_v6 }
  0x68   : > { %1457 = vmatpush.bf16.msra.mxu2 %v2513_v51  ;;  %1321 = vmatpush.bf16.msra.mxu1 %v2505_v52  ;;  %v1102_v42 = vsel %vm2662_vm2, %v1097_v37, %v1101_v34  ;;  %v1120_v51 = vunpack.c.l.b16 %v1092_v7 }
  0x69   : > { %1757 = vmatpush.bf16.msra.mxu0 %v2529_v10 }
  0x6a   : > { %1615 = vmatpush.bf16.msra.mxu3 %v2521_v29  ;;  %v1121_v29 = vunpack.c.l.b16 %v1102_v42 }
  0x6b   : > { %683 = vmatmul.bf16.gmra.mxu1 %v2980_v43  ;;  %896 = vmatmul.bf16.gmra.mxu2 %v2953_v24 }
  0x6c   : > { %v3159_v41 = vpack.c.b16 %v1121_v29, %v1120_v51 }
  0x6d   : > { %1032 = vmatmul.bf16.gmra.mxu3 %v3004_v60 }
  0x6e   : > { %1190 = vmatmul.bf16.gmra.mxu0 %v2850_v1 }
  0x7b   : > { %688 = vmatmul.bf16.gmra.mxu1 %v3004_v60  ;;  %901 = vmatmul.bf16.gmra.mxu2 %v2987_v8 }
  0x7d   : > { %1037 = vmatmul.bf16.gmra.mxu3 %v3023_v15 }
  0x7e   : > { %1195 = vmatmul.bf16.gmra.mxu0 %v2714_v23 }
  0x8b   : > { %693 = vmatmul.bf16.gmra.mxu1 %v3023_v15  ;;  %906 = vmatmul.bf16.gmra.mxu2 %v3048_v62 }
  0x8d   : > { %1042 = vmatmul.bf16.gmra.mxu3 %v3051_v21 }
  0x8e   : > { %1200 = vmatmul.bf16.gmra.mxu0 %v2852_v2 }
  0x9b   : > { %698 = vmatmul.bf16.gmra.mxu1 %v3051_v21  ;;  %911 = vmatmul.bf16.gmra.mxu2 %v3076_v33 }
  0x9d   : > { %1047 = vmatmul.bf16.gmra.mxu3 %v3079_v39 }
  0x9e   : > { %1205 = vmatmul.bf16.gmra.mxu0 %v2732_v45 }
  0xa8   : > { %v3117_v17 = vpop.f32.mrf.mxu1 }
  0xab   : > { %v529_v14 = vpop.f32.mrf.mxu0  ;;  %703 = vmatmul.bf16.gmra.mxu1 %v3079_v39  ;;  %916 = vmatmul.bf16.gmra.mxu2 %v3114_v4 }
  0xad   : > { %1052 = vmatmul.bf16.gmra.mxu3 %v3120_v40 }
  0xae   : > { %v3131_v31 = vpop.f32.mrf.mxu2  ;;  %1210 = vmatmul.bf16.gmra.mxu0 %v2858_v18 }
  0xb0   : > { %v3134_v32 = vpop.f32.mrf.mxu3  ;;  %v3138_v50 = vpop.f32.mrf.mxu1 }
  0xb3   : > { %v531_v57 = vpop.f32.mrf.mxu0 }
  0xb6   : > { %v3146_v44 = vpop.f32.mrf.mxu2 }
  0xb8   : > { %v3148_v46 = vpop.f32.mrf.mxu3  ;;  %v3152_v52 = vpop.f32.mrf.mxu1 }
  0xbb   : > { %708 = vmatmul.bf16.gmra.mxu1 %v3120_v40  ;;  %921 = vmatmul.bf16.gmra.mxu2 %v3150_v47  ;;  %v534_v22 = vpop.f32.mrf.mxu0 }
  0xbd   : > { %1057 = vmatmul.bf16.gmra.mxu3 %v3155_v20 }
  0xbe   : > { %v3162_v26 = vpop.f32.mrf.mxu2  ;;  %1215 = vmatmul.bf16.gmra.mxu0 %v3159_v41 }
  0xc0   : > { %v3165_v55 = vpop.f32.mrf.mxu3  ;;  %v3167_v56 = vpop.f32.mrf.mxu1 }
  0xc3   : > { %v536_v63 = vpop.f32.mrf.mxu0 }
  0xc6   : > { %v3169_v9 = vpop.f32.mrf.mxu2 }
  0xc8   : > { %v3171_v10 = vpop.f32.mrf.mxu3  ;;  %v674_v16 = vpop.f32.mrf.mxu1 }
  0xc9   : > { %v675_v61 = vadd.f32 %v674_v16, %v529_v14 }
  0xcb   : > { %1322 = vmatmul.bf16.vlgmr.msra.gmra.mxu1 %v2977_v48  ;;  %1458 = vmatmul.bf16.vlgmr.msra.gmra.mxu2 %v2980_v43  ;;  %v1181_v12 = vpop.f32.mrf.mxu0 }
  0xcd   : > { %1616 = vmatmul.bf16.vlgmr.msra.gmra.mxu3 %v2687_v59 }
  0xce   : > { %v887_v13 = vpop.f32.mrf.mxu2  ;;  %1758 = vmatmul.bf16.vlgmr.msra.gmra.mxu0 %v2953_v24 }
  0xcf   : > { %v927_v3 = vadd.f32 %v887_v13, %v675_v61 }
  0xd0   : > { %v1023_v5 = vpop.f32.mrf.mxu3  ;;  %v676_v58 = vpop.f32.mrf.mxu1 }
  0xd1   : > { %v1063_v28 = vadd.f32 %v1023_v5, %v927_v3  ;;  %v677_v19 = vadd.f32 %v676_v58, %v531_v57 }
  0xd3   : > { %v3177_v25 = vadd.f32 %v1181_v12, %v1063_v28  ;;  %v1183_v27 = vpop.f32.mrf.mxu0 }
  0xd6   : > { %v889_v35 = vpop.f32.mrf.mxu2 }
  0xd7   : > { %v928_v14 = vadd.f32 %v889_v35, %v677_v19 }
  0xd8   : > { %v1025_v0 = vpop.f32.mrf.mxu3  ;;  %v679_v48 = vpop.f32.mrf.mxu1 }
  0xd9   : > { %v1064_v36 = vadd.f32 %v1025_v0, %v928_v14  ;;  %v680_v43 = vadd.f32 %v679_v48, %v534_v22 }
  0xdb   : > { %1327 = vmatmul.bf16.gmra.mxu1 %v2953_v24  ;;  %1463 = vmatmul.bf16.gmra.mxu2 %v3004_v60  ;;  %v3181_v59 = vadd.f32 %v1183_v27, %v1064_v36  ;;  %v1186_v37 = vpop.f32.mrf.mxu0 }
  0xdd   : > { %1621 = vmatmul.bf16.gmra.mxu3 %v2850_v1 }
  0xde   : > { %v892_v34 = vpop.f32.mrf.mxu2  ;;  %1763 = vmatmul.bf16.gmra.mxu0 %v2987_v8 }
  0xdf   : > { %v929_v57 = vadd.f32 %v892_v34, %v680_v43 }
  0xe0   : > { %v1028_v6 = vpop.f32.mrf.mxu3  ;;  %v681_v49 = vpop.f32.mrf.mxu1 }
  0xe1   : > { %v1065_v7 = vadd.f32 %v1028_v6, %v929_v57  ;;  %v682_v42 = vadd.f32 %v681_v49, %v536_v63 }
  0xe3   : > { %v3185_v51 = vadd.f32 %v1186_v37, %v1065_v7  ;;  %v1188_v29 = vpop.f32.mrf.mxu0 }
  0xe6   : > { %v894_v22 = vpop.f32.mrf.mxu2 }
  0xe7   : > { %v930_v24 = vadd.f32 %v894_v22, %v682_v42 }
  0xe8   : > { %v1030_v16 = vpop.f32.mrf.mxu3  ;;  %v684_v60 = vpop.f32.mrf.mxu1 }
  0xe9   : > { %v1066_v61 = vadd.f32 %v1030_v16, %v930_v24  ;;  %v685_v12 = vadd.f32 %v684_v60, %v3117_v17 }
  0xeb   : > { %1332 = vmatmul.bf16.gmra.mxu1 %v2987_v8  ;;  %1468 = vmatmul.bf16.gmra.mxu2 %v3023_v15  ;;  %v3190_v1 = vadd.f32 %v1188_v29, %v1066_v61  ;;  %v1191_v13 = vpop.f32.mrf.mxu0 }
  0xed   : > { %1626 = vmatmul.bf16.gmra.mxu3 %v2714_v23 }
  0xee   : > { %v897_v63 = vpop.f32.mrf.mxu2  ;;  %1768 = vmatmul.bf16.gmra.mxu0 %v3048_v62 }
  0xef   : > { %v931_v3 = vadd.f32 %v897_v63, %v685_v12 }
  0xf0   : > { %v1033_v5 = vpop.f32.mrf.mxu3  ;;  %v686_v58 = vpop.f32.mrf.mxu1 }
  0xf1   : > { %v1067_v28 = vadd.f32 %v1033_v5, %v931_v3  ;;  %v687_v19 = vadd.f32 %v686_v58, %v3138_v50 }
  0xf3   : > { %v3195_v27 = vadd.f32 %v1191_v13, %v1067_v28  ;;  %v1193_v17 = vpop.f32.mrf.mxu0 }
  0xf6   : > { %v899_v8 = vpop.f32.mrf.mxu2 }
  0xf7   : > { %v932_v35 = vadd.f32 %v899_v8, %v687_v19  ;;  %v1240_v19 = vrot.slane %v3105_v54, 5  ;;  %v3225_v8 = vld [vmem:[%s2621_s23 + $0x6c] sm:$0xf] }
  0xf8   : > { %v1035_v15 = vpop.f32.mrf.mxu3  ;;  %v689_v14 = vpop.f32.mrf.mxu1 }
  0xf9   : > { %v1068_v0 = vadd.f32 %v1035_v15, %v932_v35  ;;  %v690_v48 = vadd.f32 %v689_v14, %v3152_v52  ;;  %v210_v35 = vld [vmem:[%s2621_s23 + $0x70] sm:$0xf] }
  0xfb   : > { %1337 = vmatmul.bf16.gmra.mxu1 %v3048_v62  ;;  %1473 = vmatmul.bf16.gmra.mxu2 %v3051_v21  ;;  %v3200_v23 = vadd.f32 %v1193_v17, %v1068_v0  ;;  %v1196_v36 = vpop.f32.mrf.mxu0  ;;  %v1242_v0 = vrot.slane %v1240_v19, 4 }
  0xfd   : > { %1631 = vmatmul.bf16.gmra.mxu3 %v2852_v2 }
  0xfe   : > { %v902_v50 = vpop.f32.mrf.mxu2  ;;  %1773 = vmatmul.bf16.gmra.mxu0 %v3076_v33 }
  0xff   : > { %v933_v43 = vadd.f32 %v902_v50, %v690_v48  ;;  %v1243_v48 = vrot.slane %v3123_v11, 5  ;;  %v1529_v50 = vshrl.u32 %v210_v35, 16 }
 0x100   : > { %v1038_v37 = vpop.f32.mrf.mxu3  ;;  %v691_v34 = vpop.f32.mrf.mxu1 }
 0x101   : > { %v1069_v57 = vadd.f32 %v1038_v37, %v933_v43  ;;  %v692_v6 = vadd.f32 %v691_v34, %v3167_v56 }
 0x103   : > { %v3205_v49 = vadd.f32 %v1196_v36, %v1069_v57  ;;  %v1198_v52 = vpop.f32.mrf.mxu0  ;;  %v1525_v36 = vshll.u32 %v210_v35, 16 }
 0x106   : > { %v904_v62 = vpop.f32.mrf.mxu2 }
 0x107   : > { %v934_v7 = vadd.f32 %v904_v62, %v692_v6  ;;  %v1531_v62 = vrot.slane %v1529_v50, 4  ;;  %v2464_v50 = vld [vmem:[%s2621_s23 + $0x6c] sm:$0xff] }
 0x108   : > { %v1040_v21 = vpop.f32.mrf.mxu3  ;;  %v694_v42 = vpop.f32.mrf.mxu1 }
 0x109   : > { %v1070_v29 = vadd.f32 %v1040_v21, %v934_v7  ;;  %v695_v24 = vadd.f32 %v694_v42, %v3131_v31  ;;  %v211_v21 = vld [vmem:[%s2621_s23 + $0x74] sm:$0x1]  ;;  %s2454_s23 = sshll.u32 %s3322_s13, 7 }
 0x10a   : > { %s3273_s19 = scalar_lea.vmem %s3315_s2, %s2454_s23 }
 0x10b   : > { %1342 = vmatmul.bf16.gmra.mxu1 %v3076_v33  ;;  %1478 = vmatmul.bf16.gmra.mxu2 %v3079_v39  ;;  %v3209_v2 = vadd.f32 %v1198_v52, %v1070_v29  ;;  %v1201_v22 = vpop.f32.mrf.mxu0  ;;  %v1527_v52 = vrot.slane %v1525_v36, 5 }
 0x10d   : > { %1636 = vmatmul.bf16.gmra.mxu3 %v2732_v45 }
 0x10e   : > { %v907_v56 = vpop.f32.mrf.mxu2  ;;  %1778 = vmatmul.bf16.gmra.mxu0 %v3114_v4 }
 0x10f   : > { %v935_v16 = vadd.f32 %v907_v56, %v695_v24 }
 0x110   : > { %v1043_v60 = vpop.f32.mrf.mxu3  ;;  %v696_v61 = vpop.f32.mrf.mxu1 }
 0x111   : > { %v1071_v12 = vadd.f32 %v1043_v60, %v935_v16  ;;  %v697_v39 = vadd.f32 %v696_v61, %v3146_v44  ;;  %v1532_v61 = vor.u32 %v1531_v62, %v1527_v52 }
 0x113   : > { %v3214_v13 = vadd.f32 %v1201_v22, %v1071_v12  ;;  %v1203_v33 = vpop.f32.mrf.mxu0  ;;  %v1535_v12 = vshll.u32 %v211_v21, 16 }
 0x116   : > { %v909_v63 = vpop.f32.mrf.mxu2 }
 0x117   : > { %v936_v3 = vadd.f32 %v909_v63, %v697_v39  ;;  %v1676_v63 = vrot.slane %v210_v35, 5 }
 0x118   : > { %v1045_v5 = vpop.f32.mrf.mxu3  ;;  %v699_v45 = vpop.f32.mrf.mxu1 }
 0x119   : > { %v1072_v58 = vadd.f32 %v1045_v5, %v936_v3  ;;  %v700_v17 = vadd.f32 %v699_v45, %v3162_v26  ;;  %v1519_v26 = vshll.u32 %v3225_v8, 16  ;;  %v1533_v45 = vrot.slane %v1532_v61, 4 }
 0x11b   : > { %1347 = vmatmul.bf16.gmra.mxu1 %v3114_v4  ;;  %1483 = vmatmul.bf16.gmra.mxu2 %v3120_v40  ;;  %v3219_v31 = vadd.f32 %v1203_v33, %v1072_v58  ;;  %v1206_v28 = vpop.f32.mrf.mxu0  ;;  %v2254_v40 = vrot.slane %v3102_v53, 9  ;;  %v1244_v53 = vsel %vm2886_vm5, %v1242_v0, %v1243_v48  ;;  %v1521_v6 = vrot.slane %v1519_v26, 5 }
 0x11c   : > { %v1263_v24 = vunpack.c.l.b16 %v1244_v53  ;;  %v1537_v58 = vrot.slane %v1535_v12, 5 }
 0x11d   : > { %1641 = vmatmul.bf16.gmra.mxu3 %v2858_v18  ;;  %v1516_v18 = vshrl.u32 %v3225_v8, 16  ;;  %v1241_v34 = vsel %vm2886_vm5, %v2254_v40, %v1240_v19 }
 0x11e   : > { %v912_v44 = vpop.f32.mrf.mxu2  ;;  %1783 = vmatmul.bf16.gmra.mxu0 %v3150_v47  ;;  %v1262_v22 = vunpack.c.l.b16 %v1241_v34 }
 0x11f   : > { %v937_v15 = vadd.f32 %v912_v44, %v700_v17  ;;  %v1518_v57 = vrot.slane %v1516_v18, 4 }
 0x120   : > { %v1048_v14 = vpop.f32.mrf.mxu3  ;;  %v701_v4 = vpop.f32.mrf.mxu1  ;;  %v1264_v33 = vpack.c.b16 %v1263_v24, %v1262_v22 }
 0x121   : > { %v1073_v54 = vadd.f32 %v1048_v14, %v937_v15  ;;  %v702_v11 = vadd.f32 %v701_v4, %v3169_v9  ;;  %v1522_v60 = vor.u32 %v1521_v6, %v1518_v57  ;;  %v1679_v15 = vrot.slane %v211_v21, 5 }
 0x123   : > { %v3233_v43 = vadd.f32 %v1206_v28, %v1073_v54  ;;  %v1208_v37 = vpop.f32.mrf.mxu0  ;;  %v1523_v5 = vrot.slane %v1522_v60, 4 }
 0x126   : > { %v914_v7 = vpop.f32.mrf.mxu2 }
 0x127   : > { %v938_v42 = vadd.f32 %v914_v7, %v702_v11 }
 0x128   : > { %v1050_v29 = vpop.f32.mrf.mxu3  ;;  %v704_v56 = vpop.f32.mrf.mxu1 }
 0x129   : > { %v1074_v16 = vadd.f32 %v1050_v29, %v938_v42  ;;  %v705_v3 = vadd.f32 %v704_v56, %v3134_v32  ;;  %v1538_v32 = vsel %vm2662_vm2, %v1533_v45, %v1537_v58 }
 0x12a   : > { %v1557_v0 = vunpack.c.l.b16 %v1538_v32 }
 0x12b   : > { %1352 = vmatmul.bf16.gmra.mxu1 %v3150_v47  ;;  %1488 = vmatmul.bf16.gmra.mxu2 %v3155_v20  ;;  %v3243_v9 = vadd.f32 %v1208_v37, %v1074_v16  ;;  %v1211_v39 = vpop.f32.mrf.mxu0  ;;  %v2403_v47 = vrot.slane %v3225_v8, 9  ;;  %v1678_v20 = vrot.slane %v1676_v63, 4 }
 0x12d   : > { %1646 = vmatmul.bf16.gmra.mxu3 %v3159_v41  ;;  %v1528_v41 = vsel %vm2662_vm2, %v1523_v5, %v1527_v52  ;;  %v1677_v48 = vsel %vm2886_vm5, %v2403_v47, %v1676_v63  ;;  %v1680_v8 = vsel %vm2886_vm5, %v1678_v20, %v1679_v15 }
 0x12e   : > { %v917_v28 = vpop.f32.mrf.mxu2  ;;  %1788 = vmatmul.bf16.gmra.mxu0 %v1264_v33  ;;  %v1556_v40 = vunpack.c.l.b16 %v1528_v41  ;;  %v1698_v37 = vunpack.c.l.b16 %v1677_v48  ;;  %v1699_v30 = vunpack.c.l.b16 %v1680_v8 }
 0x12f   : > { %v939_v19 = vadd.f32 %v917_v28, %v705_v3 }
 0x130   : > { %v1053_v17 = vpop.f32.mrf.mxu3  ;;  %v706_v44 = vpop.f32.mrf.mxu1  ;;  %v1558_v53 = vpack.c.b16 %v1557_v0, %v1556_v40  ;;  %v1700_v11 = vpack.c.b16 %v1699_v30, %v1698_v37 }
 0x131   : > { %v1075_v14 = vadd.f32 %v1053_v17, %v939_v19  ;;  %v707_v18 = vadd.f32 %v706_v44, %v3148_v46 }
 0x133   : > { %v3252_v35 = vadd.f32 %v1211_v39, %v1075_v14  ;;  %v1213_v4 = vpop.f32.mrf.mxu0 }
 0x136   : > { %v919_v54 = vpop.f32.mrf.mxu2 }
 0x137   : > { %v940_v26 = vadd.f32 %v919_v54, %v707_v18 }
 0x138   : > { %v1055_v36 = vpop.f32.mrf.mxu3  ;;  %v709_v34 = vpop.f32.mrf.mxu1 }
 0x139   : > { %v1076_v57 = vadd.f32 %v1055_v36, %v940_v26  ;;  %v710_v38 = vadd.f32 %v709_v34, %v3165_v55 }
 0x13b   : > { %1357 = vmatmul.bf16.gmra.mxu1 %v1264_v33  ;;  %1493 = vmatmul.bf16.gmra.mxu2 %v2464_v50  ;;  %v3260_v6 = vadd.f32 %v1213_v4, %v1076_v57  ;;  %v1216_v52 = vpop.f32.mrf.mxu0 }
 0x13d   : > { %1651 = vmatmul.bf16.gmra.mxu3 %v1558_v53 }
 0x13e   : > { %v922_v62 = vpop.f32.mrf.mxu2  ;;  %1793 = vmatmul.bf16.gmra.mxu0 %v1700_v11 }
 0x13f   : > { %v941_v46 = vadd.f32 %v922_v62, %v710_v38 }
 0x140   : > { %v1058_v7 = vpop.f32.mrf.mxu3  ;;  %v711_v21 = vpop.f32.mrf.mxu1 }
 0x141   : > { %v1077_v42 = vadd.f32 %v1058_v7, %v941_v46  ;;  %v712_v24 = vadd.f32 %v711_v21, %v3171_v10 }
 0x143   : > { %v3263_v29 = vadd.f32 %v1216_v52, %v1077_v42  ;;  %v1218_v22 = vpop.f32.mrf.mxu0 }
 0x146   : > { %v924_v56 = vpop.f32.mrf.mxu2 }
 0x147   : > { %v942_v16 = vadd.f32 %v924_v56, %v712_v24 }
 0x148   : > { %v1060_v60 = vpop.f32.mrf.mxu3  ;;  %v1323_v61 = vpop.f32.mrf.mxu1 }
 0x149   : > { %v1078_v12 = vadd.f32 %v1060_v60, %v942_v16  ;;  %v1363_v39 = vadd.f32 %v1323_v61, %v3177_v25 }
 0x14b   : > { %v3266_v33 = vadd.f32 %v1218_v22, %v1078_v12  ;;  %v1759_v55 = vpop.f32.mrf.mxu0 }
 0x14e   : > { %v1459_v63 = vpop.f32.mrf.mxu2 }
 0x14f   : > { %v1499_v3 = vadd.f32 %v1459_v63, %v1363_v39 }
 0x150   : > { %v1617_v5 = vpop.f32.mrf.mxu3  ;;  %v1325_v45 = vpop.f32.mrf.mxu1 }
 0x151   : > { %v1657_v58 = vadd.f32 %v1617_v5, %v1499_v3  ;;  %v1364_v19 = vadd.f32 %v1325_v45, %v3181_v59 }
 0x153   : > { %v1799_v10 = vadd.f32 %v1759_v55, %v1657_v58  ;;  %v1761_v28 = vpop.f32.mrf.mxu0 }
 0x155   : > { %1815 = vst [vmem:[%s3273_s19] sm:$0xff] %v1799_v10  ;;  %v1853_v41 = vmul.f32 %v1799_v10, %v1799_v10 }
 0x156   : > { %v1461_v17 = vpop.f32.mrf.mxu2 }
 0x157   : > { %v1500_v25 = vadd.f32 %v1461_v17, %v1364_v19 }
 0x158   : > { %v1619_v44 = vpop.f32.mrf.mxu3  ;;  %v1328_v47 = vpop.f32.mrf.mxu1 }
 0x159   : > { %v1658_v20 = vadd.f32 %v1619_v44, %v1500_v25  ;;  %v1365_v40 = vadd.f32 %v1328_v47, %v3185_v51 }
 0x15b   : > { %v1800_v15 = vadd.f32 %v1761_v28, %v1658_v20  ;;  %v1764_v14 = vpop.f32.mrf.mxu0 }
 0x15d   : > { %1816 = vst [vmem:[%s3273_s19 + $0x8] sm:$0xff] %v1800_v15  ;;  %v1831_v32 = vadd.f32 %v1800_v15, %v1799_v10  ;;  %v1854_v4 = vmul.f32 %v1800_v15, %v1800_v15 }
 0x15e   : > { %v1464_v0 = vpop.f32.mrf.mxu2 }
 0x15f   : > { %v1869_v48 = vadd.f32 %v1854_v4, %v1853_v41  ;;  %v1501_v8 = vadd.f32 %v1464_v0, %v1365_v40 }
 0x160   : > { %v1622_v18 = vpop.f32.mrf.mxu3  ;;  %v1330_v54 = vpop.f32.mrf.mxu1 }
 0x161   : > { %v1659_v59 = vadd.f32 %v1622_v18, %v1501_v8  ;;  %v1366_v30 = vadd.f32 %v1330_v54, %v3190_v1 }
 0x163   : > { %v1801_v26 = vadd.f32 %v1764_v14, %v1659_v59  ;;  %v1766_v36 = vpop.f32.mrf.mxu0 }
 0x165   : > { %1817 = vst [vmem:[%s3273_s19 + $0x10] sm:$0xff] %v1801_v26  ;;  %v1832_v50 = vadd.f32 %v1831_v32, %v1801_v26  ;;  %v1855_v37 = vmul.f32 %v1801_v26, %v1801_v26 }
 0x166   : > { %v1466_v34 = vpop.f32.mrf.mxu2 }
 0x167   : > { %v1870_v53 = vadd.f32 %v1869_v48, %v1855_v37  ;;  %v1502_v57 = vadd.f32 %v1466_v34, %v1366_v30 }
 0x168   : > { %v1624_v11 = vpop.f32.mrf.mxu3  ;;  %v1333_v52 = vpop.f32.mrf.mxu1 }
 0x169   : > { %v1660_v51 = vadd.f32 %v1624_v11, %v1502_v57  ;;  %v1367_v21 = vadd.f32 %v1333_v52, %v3195_v27 }
 0x16b   : > { %v1802_v38 = vadd.f32 %v1766_v36, %v1660_v51  ;;  %v1769_v62 = vpop.f32.mrf.mxu0 }
 0x16d   : > { %1818 = vst [vmem:[%s3273_s19 + $0x18] sm:$0xff] %v1802_v38  ;;  %v1833_v46 = vadd.f32 %v1832_v50, %v1802_v38  ;;  %v1856_v7 = vmul.f32 %v1802_v38, %v1802_v38 }
 0x16e   : > { %v1469_v42 = vpop.f32.mrf.mxu2 }
 0x16f   : > { %v1871_v22 = vadd.f32 %v1870_v53, %v1856_v7  ;;  %v1503_v24 = vadd.f32 %v1469_v42, %v1367_v21 }
 0x170   : > { %v1627_v56 = vpop.f32.mrf.mxu3  ;;  %v1335_v16 = vpop.f32.mrf.mxu1 }
 0x171   : > { %v1661_v1 = vadd.f32 %v1627_v56, %v1503_v24  ;;  %v1368_v39 = vadd.f32 %v1335_v16, %v3200_v23 }
 0x173   : > { %v1803_v60 = vadd.f32 %v1769_v62, %v1661_v1  ;;  %v1771_v61 = vpop.f32.mrf.mxu0 }
 0x175   : > { %1819 = vst [vmem:[%s3273_s19 + $0x20] sm:$0xff] %v1803_v60  ;;  %v1834_v12 = vadd.f32 %v1833_v46, %v1803_v60  ;;  %v1857_v55 = vmul.f32 %v1803_v60, %v1803_v60 }
 0x176   : > { %v1471_v63 = vpop.f32.mrf.mxu2 }
 0x177   : > { %v1872_v3 = vadd.f32 %v1871_v22, %v1857_v55  ;;  %v1504_v5 = vadd.f32 %v1471_v63, %v1368_v39 }
 0x178   : > { %v1629_v45 = vpop.f32.mrf.mxu3  ;;  %v1338_v58 = vpop.f32.mrf.mxu1 }
 0x179   : > { %v1662_v27 = vadd.f32 %v1629_v45, %v1504_v5  ;;  %v1369_v25 = vadd.f32 %v1338_v58, %v3205_v49 }
 0x17b   : > { %v1804_v10 = vadd.f32 %v1771_v61, %v1662_v27  ;;  %v1774_v28 = vpop.f32.mrf.mxu0 }
 0x17d   : > { %1820 = vst [vmem:[%s3273_s19 + $0x28] sm:$0xff] %v1804_v10  ;;  %v1835_v19 = vadd.f32 %v1834_v12, %v1804_v10  ;;  %v1858_v17 = vmul.f32 %v1804_v10, %v1804_v10 }
 0x17e   : > { %v1474_v44 = vpop.f32.mrf.mxu2 }
 0x17f   : > { %v1873_v47 = vadd.f32 %v1872_v3, %v1858_v17  ;;  %v1505_v20 = vadd.f32 %v1474_v44, %v1369_v25 }
 0x180   : > { %v1632_v15 = vpop.f32.mrf.mxu3  ;;  %v1340_v14 = vpop.f32.mrf.mxu1 }
 0x181   : > { %v1663_v23 = vadd.f32 %v1632_v15, %v1505_v20  ;;  %v1370_v0 = vadd.f32 %v1340_v14, %v3209_v2 }
 0x183   : > { %v1805_v41 = vadd.f32 %v1774_v28, %v1663_v23  ;;  %v1776_v32 = vpop.f32.mrf.mxu0 }
 0x185   : > { %1821 = vst [vmem:[%s3273_s19 + $0x30] sm:$0xff] %v1805_v41  ;;  %v1836_v4 = vadd.f32 %v1835_v19, %v1805_v41  ;;  %v1859_v40 = vmul.f32 %v1805_v41, %v1805_v41 }
 0x186   : > { %v1476_v48 = vpop.f32.mrf.mxu2 }
 0x187   : > { %v1874_v8 = vadd.f32 %v1873_v47, %v1859_v40  ;;  %v1506_v18 = vadd.f32 %v1476_v48, %v1370_v0 }
 0x188   : > { %v1634_v54 = vpop.f32.mrf.mxu3  ;;  %v1343_v59 = vpop.f32.mrf.mxu1 }
 0x189   : > { %v1664_v49 = vadd.f32 %v1634_v54, %v1506_v18  ;;  %v1371_v30 = vadd.f32 %v1343_v59, %v3214_v13 }
 0x18b   : > { %v1806_v26 = vadd.f32 %v1776_v32, %v1664_v49  ;;  %v1779_v36 = vpop.f32.mrf.mxu0 }
 0x18d   : > { %1822 = vst [vmem:[%s3273_s19 + $0x38] sm:$0xff] %v1806_v26  ;;  %v1837_v50 = vadd.f32 %v1836_v4, %v1806_v26  ;;  %v1860_v37 = vmul.f32 %v1806_v26, %v1806_v26 }
 0x18e   : > { %v1479_v34 = vpop.f32.mrf.mxu2 }
 0x18f   : > { %v1875_v53 = vadd.f32 %v1874_v8, %v1860_v37  ;;  %v1507_v57 = vadd.f32 %v1479_v34, %v1371_v30 }
 0x190   : > { %v1637_v11 = vpop.f32.mrf.mxu3  ;;  %v1345_v52 = vpop.f32.mrf.mxu1 }
 0x191   : > { %v1665_v2 = vadd.f32 %v1637_v11, %v1507_v57  ;;  %v1372_v7 = vadd.f32 %v1345_v52, %v3219_v31 }
 0x193   : > { %v1807_v51 = vadd.f32 %v1779_v36, %v1665_v2  ;;  %v1781_v38 = vpop.f32.mrf.mxu0 }
 0x195   : > { %1823 = vst [vmem:[%s3273_s19 + $0x40] sm:$0xff] %v1807_v51  ;;  %v1838_v62 = vadd.f32 %v1837_v50, %v1807_v51  ;;  %v1861_v46 = vmul.f32 %v1807_v51, %v1807_v51 }
 0x196   : > { %v1481_v21 = vpop.f32.mrf.mxu2 }
 0x197   : > { %v1876_v42 = vadd.f32 %v1875_v53, %v1861_v46  ;;  %v1508_v22 = vadd.f32 %v1481_v21, %v1372_v7 }
 0x198   : > { %v1639_v24 = vpop.f32.mrf.mxu3  ;;  %v1348_v56 = vpop.f32.mrf.mxu1 }
 0x199   : > { %v1666_v13 = vadd.f32 %v1639_v24, %v1508_v22  ;;  %v1373_v12 = vadd.f32 %v1348_v56, %v3233_v43 }
 0x19b   : > { %v1808_v16 = vadd.f32 %v1781_v38, %v1666_v13  ;;  %v1784_v1 = vpop.f32.mrf.mxu0 }
 0x19d   : > { %1824 = vst [vmem:[%s3273_s19 + $0x48] sm:$0xff] %v1808_v16  ;;  %v1839_v60 = vadd.f32 %v1838_v62, %v1808_v16  ;;  %v1862_v61 = vmul.f32 %v1808_v16, %v1808_v16 }
 0x19e   : > { %v1484_v55 = vpop.f32.mrf.mxu2 }
 0x19f   : > { %v1877_v39 = vadd.f32 %v1876_v42, %v1862_v61  ;;  %v1509_v63 = vadd.f32 %v1484_v55, %v1373_v12 }
 0x1a0   : > { %v1642_v3 = vpop.f32.mrf.mxu3  ;;  %v1350_v5 = vpop.f32.mrf.mxu1 }
 0x1a1   : > { %v1667_v31 = vadd.f32 %v1642_v3, %v1509_v63  ;;  %v1374_v28 = vadd.f32 %v1350_v5, %v3243_v9 }
 0x1a3   : > { %v1809_v45 = vadd.f32 %v1784_v1, %v1667_v31  ;;  %v1786_v58 = vpop.f32.mrf.mxu0 }
 0x1a5   : > { %1825 = vst [vmem:[%s3273_s19 + $0x50] sm:$0xff] %v1809_v45  ;;  %v1840_v27 = vadd.f32 %v1839_v60, %v1809_v45  ;;  %v1863_v10 = vmul.f32 %v1809_v45, %v1809_v45 }
 0x1a6   : > { %v1486_v19 = vpop.f32.mrf.mxu2 }
 0x1a7   : > { %v1878_v17 = vadd.f32 %v1877_v39, %v1863_v10  ;;  %v1510_v25 = vadd.f32 %v1486_v19, %v1374_v28 }
 0x1a8   : > { %v1644_v44 = vpop.f32.mrf.mxu3  ;;  %v1353_v43 = vpop.f32.mrf.mxu1 }
 0x1a9   : > { %v1668_v47 = vadd.f32 %v1644_v44, %v1510_v25  ;;  %v1375_v41 = vadd.f32 %v1353_v43, %v3252_v35 }
 0x1ab   : > { %v1810_v20 = vadd.f32 %v1786_v58, %v1668_v47  ;;  %v1789_v15 = vpop.f32.mrf.mxu0 }
 0x1ad   : > { %1826 = vst [vmem:[%s3273_s19 + $0x58] sm:$0xff] %v1810_v20  ;;  %v1841_v14 = vadd.f32 %v1840_v27, %v1810_v20  ;;  %v1864_v23 = vmul.f32 %v1810_v20, %v1810_v20 }
 0x1ae   : > { %v1489_v32 = vpop.f32.mrf.mxu2 }
 0x1af   : > { %v1879_v4 = vadd.f32 %v1878_v17, %v1864_v23  ;;  %v1511_v40 = vadd.f32 %v1489_v32, %v1375_v41 }
 0x1b0   : > { %v1647_v0 = vpop.f32.mrf.mxu3  ;;  %v1355_v9 = vpop.f32.mrf.mxu1 }
 0x1b1   : > { %v1669_v48 = vadd.f32 %v1647_v0, %v1511_v40  ;;  %v1376_v59 = vadd.f32 %v1355_v9, %v3260_v6 }
 0x1b3   : > { %v1811_v8 = vadd.f32 %v1789_v15, %v1669_v48  ;;  %v1791_v49 = vpop.f32.mrf.mxu0 }
 0x1b5   : > { %1827 = vst [vmem:[%s3273_s19 + $0x60] sm:$0xff] %v1811_v8  ;;  %v1842_v18 = vadd.f32 %v1841_v14, %v1811_v8  ;;  %v1865_v54 = vmul.f32 %v1811_v8, %v1811_v8 }
 0x1b6   : > { %v1491_v26 = vpop.f32.mrf.mxu2 }
 0x1b7   : > { %v1880_v36 = vadd.f32 %v1879_v4, %v1865_v54  ;;  %v1512_v50 = vadd.f32 %v1491_v26, %v1376_v59 }
 0x1b8   : > { %v1649_v37 = vpop.f32.mrf.mxu3  ;;  %v1358_v35 = vpop.f32.mrf.mxu1 }
 0x1b9   : > { %v1670_v30 = vadd.f32 %v1649_v37, %v1512_v50  ;;  %v1377_v11 = vadd.f32 %v1358_v35, %v3263_v29 }
 0x1bb   : > { %v1812_v34 = vadd.f32 %v1791_v49, %v1670_v30  ;;  %v1794_v6 = vpop.f32.mrf.mxu0 }
 0x1bd   : > { %1828 = vst [vmem:[%s3273_s19 + $0x68] sm:$0xff] %v1812_v34  ;;  %v1843_v53 = vadd.f32 %v1842_v18, %v1812_v34  ;;  %v1866_v57 = vmul.f32 %v1812_v34, %v1812_v34 }
 0x1be   : > { %v1494_v52 = vpop.f32.mrf.mxu2 }
 0x1bf   : > { %v1881_v2 = vadd.f32 %v1880_v36, %v1866_v57  ;;  %v1513_v51 = vadd.f32 %v1494_v52, %v1377_v11 }
 0x1c0   : > { %v1652_v38 = vpop.f32.mrf.mxu3  ;;  %v1360_v46 = vpop.f32.mrf.mxu1 }
 0x1c1   : > { %v1671_v62 = vadd.f32 %v1652_v38, %v1513_v51  ;;  %v1378_v22 = vadd.f32 %v1360_v46, %v3266_v33 }
 0x1c3   : > { %v1813_v7 = vadd.f32 %v1794_v6, %v1671_v62  ;;  %v1796_v1 = vpop.f32.mrf.mxu0 }
 0x1c5   : > { %1829 = vst [vmem:[%s3273_s19 + $0x70] sm:$0xff] %v1813_v7  ;;  %v1844_v21 = vadd.f32 %v1843_v53, %v1813_v7  ;;  %v1867_v42 = vmul.f32 %v1813_v7, %v1813_v7 }
 0x1c6   : > { %v1496_v24 = vpop.f32.mrf.mxu2 }
 0x1c7   : > { %v1882_v56 = vadd.f32 %v1881_v2, %v1867_v42  ;;  %v1514_v13 = vadd.f32 %v1496_v24, %v1378_v22 }
 0x1c8   : > { %v1654_v16 = vpop.f32.mrf.mxu3 }
 0x1c9   : > { %v1672_v29 = vadd.f32 %v1654_v16, %v1514_v13 }
 0x1cb   : > { %v1814_v60 = vadd.f32 %v1796_v1, %v1672_v29 }
 0x1cd   : > { %1830 = vst [vmem:[%s3273_s19 + $0x78] sm:$0xff] %v1814_v60  ;;  %v1845_v61 = vadd.f32 %v1844_v21, %v1814_v60  ;;  %v1868_v12 = vmul.f32 %v1814_v60, %v1814_v60 }
 0x1cf   : > { %v1846_v55 = vrot.slane %v1845_v61, 4  ;;  %v1883_v39 = vadd.f32 %v1882_v56, %v1868_v12 }
 0x1d1   : > { %v1847_v63 = vadd.f32 %v1846_v55, %v1845_v61  ;;  %v1884_v3 = vrot.slane %v1883_v39, 4 }
 0x1d3   : > { %v1848_v5 = vrot.slane %v1847_v63, 2  ;;  %v1885_v31 = vadd.f32 %v1884_v3, %v1883_v39 }
 0x1d5   : > { %v1849_v45 = vadd.f32 %v1848_v5, %v1847_v63  ;;  %v1886_v33 = vrot.slane %v1885_v31, 2 }
 0x1d7   : > { %v1850_v58 = vrot.slane %v1849_v45, 1  ;;  %v1887_v27 = vadd.f32 %v1886_v33, %v1885_v31 }
 0x1d9   : > { %v1851_v10 = vadd.f32 %v1850_v58, %v1849_v45  ;;  %v1888_v28 = vrot.slane %v1887_v27, 1 }
 0x1db   : > { %1852 = vst [vmem:[%s181_s24] sm:$0x1] %v1851_v10  ;;  %v1889_v19 = vadd.f32 %v1888_v28, %v1887_v27 }
 0x1dd   : > { %1890 = vst [vmem:[%s181_s24 + $0x1] sm:$0x1] %v1889_v19 }
 0x1de PF: > { %s14_s12 = sadd.s32 1, %s2576_s12  }
 0x1df   : > { %p11_p4 = scmp.ge.s32.totalorder %s14_s12, 6  }
 0x1e1   :  { %13 = sbr.rel (!%p11_p4) target bundleno = 1 (0x1), region = 78 }

</bundles_post_ra>
